<compile_context>
chip_gen: v7x
topology: tpu7x:2x2x1
jax: 0.10.0
libtpu: 0.0.40
codegen_flags: <defaults>
</compile_context>

<pallas_src>
import jax
import jax.numpy as jnp
from jax import lax
from jax.experimental import pallas as pl
from jax.experimental.pallas import tpu as pltpu


def _round_up(a: int, b: int) -> int:
    return (a + b - 1) // b * b


def _vmem_capacity_bytes() -> int:
    """Physical per-core VMEM, with a conservative fallback."""
    try:
        info = pltpu.get_tpu_info()
        cap = int(getattr(info, "vmem_capacity_bytes", 0))
        if cap > 0:
            return cap
    except Exception:
        pass
    return 64 << 20  # smallest per-core VMEM across v5e / v6e / v7x


def _tn_and_padded_hidden(hidden: int, target: int) -> tuple[int, int]:
    """Pick a hidden tile (multiple of 128) and the padded hidden extent."""
    target = max(128, target - target % 128)
    if hidden <= target:
        tn = hidden if hidden % 128 == 0 else _round_up(hidden, 128)
        return tn, _round_up(hidden, tn)
    if hidden % 128 == 0:
        t = target
        while t >= 128:
            if hidden % t == 0:
                return t, hidden
            t -= 128
    # Ragged hidden: pad the weight hidden axis up to a whole number of tiles.
    return target, _round_up(hidden, target)


def _select_config(M, dim, hidden, xb, wb, vmem_cap, sub, tm_req, tn_req):
    """Pick (tm, tn, hidden_padded, io_buffer_count) fitting the VMEM budget."""
    budget = max(vmem_cap - (8 << 20), 16 << 20)   # headroom for Mosaic scratch
    if tm_req is None:
        tm_req = 512 if vmem_cap >= (96 << 20) else 384
    if tn_req is None:
        tn_req = 512 if vmem_cap >= (96 << 20) else 256

    def footprint(tm, tn, n_io_bufs):
        return (n_io_bufs * tm * dim * xb        # x + out tiles
                + 2 * 3 * tn * dim * wb          # W1 + W3 + W2, double-buffered
                + tm * dim * 4)                  # f32 accumulator

    m_cap = _round_up(max(M, 1), sub)
    tm_opts = sorted({min(_round_up(t, sub), m_cap)
                      for t in (tm_req, 512, 384, 256, 128, 64, 32, sub)},
                     reverse=True)
    tn_opts = sorted({max(128, t) for t in (tn_req, 512, 384, 256, 128)},
                     reverse=True)

    # Preference: largest tm first (weight-reuse roofline), then keep tn >= 256
    # with double-buffered x/out, then single-buffer x/out (Buffered(1)) before
    # shrinking tn to 128 or tm below its target.
    for tm in tm_opts:
        for n_io, tn_floor in ((4, 256), (2, 256), (4, 128), (2, 128)):
            for tn_t in tn_opts:
                if tn_t < tn_floor:
                    continue
                tn, hidden_p = _tn_and_padded_hidden(hidden, tn_t)
                if footprint(tm, tn, n_io) <= budget:
                    return tm, tn, hidden_p, (2 if n_io == 4 else 1)
    tn, hidden_p = _tn_and_padded_hidden(hidden, 128)
    return tm_opts[-1], tn, hidden_p, 1


# A(m, k) . B(n, k) -> (m, n)   (contract last dims of both operands)
_CONTRACT_LAST = (((1,), (1,)), ((), ()))


def _swiglu_kernel(x_ref, w1_ref, w3_ref, w2_ref, o_ref, acc_ref):
    # x_ref  : (tm, dim)     token tile (constant along the hidden grid axis)
    # w1_ref : (tn, dim)     rows [h*tn:(h+1)*tn) of W1
    # w3_ref : (tn, dim)     rows [h*tn:(h+1)*tn) of W3
    # w2_ref : (dim, tn)     cols [h*tn:(h+1)*tn) of W2
    # o_ref  : (tm, dim)     output tile (revisited along the hidden axis)
    # acc_ref: (tm, dim) f32 accumulator scratch
    h_idx = pl.program_id(1)

    @pl.when(h_idx == 0)
    def _():
        acc_ref[...] = jnp.zeros_like(acc_ref)

    x = x_ref[...]
    # h = x @ W1_chunk^T ; g = x @ W3_chunk^T  (f32 accumulation on the MXU)
    h = lax.dot_general(x, w1_ref[...], _CONTRACT_LAST,
                        preferred_element_type=jnp.float32)
    g = lax.dot_general(x, w3_ref[...], _CONTRACT_LAST,
                        preferred_element_type=jnp.float32)
    # SiLU(h) * g: exp + approximate reciprocal both run on the EUP slot.
    act = (h * pl.reciprocal(1.0 + jnp.exp(-h), approx=True)) * g
    # Partial second matmul: act_chunk @ W2_chunk^T, accumulated over hidden.
    acc_ref[...] += lax.dot_general(act.astype(w2_ref.dtype), w2_ref[...],
                                    _CONTRACT_LAST,
                                    preferred_element_type=jnp.float32)

    @pl.when(h_idx == pl.num_programs(1) - 1)
    def _():
        o_ref[...] = acc_ref[...].astype(o_ref.dtype)


def liger_swiglu_mlp(x, w1, w3, w2, *, tm: int | None = None, tn: int | None = None):
    """SwiGLU MLP forward.

    x : (..., dim)
    w1, w3 : (hidden, dim)   (nn.Linear weight layout, no transpose needed)
    w2 : (dim, hidden)
    """
    orig_shape = x.shape
    dim = orig_shape[-1]
    hidden = w1.shape[0]
    assert w1.shape == (hidden, dim) and w3.shape == (hidden, dim)
    assert w2.shape == (dim, hidden)
    # NOTE: for lane-dense output stores dim should be a multiple of 128;
    # arbitrary dim is still correct since the blocks cover the full feature
    # axis.

    x2d = x.reshape(-1, dim)
    M = x2d.shape[0]

    xb = jnp.dtype(x.dtype).itemsize
    wb = jnp.dtype(w1.dtype).itemsize
    sub = 16 if xb == 2 else 8

    vmem_cap = _vmem_capacity_bytes()
    tm_eff, tn_eff, hidden_p, io_bufs = _select_config(
        M, dim, hidden, xb, wb, vmem_cap, sub, tm, tn)

    Mp = _round_up(M, tm_eff)
    if Mp != M:
        x2d = jnp.pad(x2d, ((0, Mp - M), (0, 0)))
    if hidden_p != hidden:
        # Robustness fallback for ragged hidden dims (not a multiple of 128):
        # padded rows of W1/W3 give act == 0, so the result is unchanged.
        # This copies the weights once per call, so prefer 128-aligned hidden
        # for production sizes.
        pad_h = hidden_p - hidden
        w1 = jnp.pad(w1, ((0, pad_h), (0, 0)))
        w3 = jnp.pad(w3, ((0, pad_h), (0, 0)))
        w2 = jnp.pad(w2, ((0, 0), (0, pad_h)))

    grid = (Mp // tm_eff, hidden_p // tn_eff)

    # VMEM budget: io_bufs-deep x/out + double-buffered weights + f32 acc,
    # clamped to the physical capacity of this chip generation.
    footprint = (2 * io_bufs * tm_eff * dim * xb
                 + 2 * 3 * tn_eff * dim * wb
                 + tm_eff * dim * 4)
    vmem_limit = min(max(footprint + (4 << 20), 32 << 20), vmem_cap - (2 << 20))

    io_kwargs = {} if io_bufs == 2 else {"pipeline_mode": pl.Buffered(1)}
    x_spec = pl.BlockSpec((tm_eff, dim), lambda i, h: (i, 0), **io_kwargs)
    out_spec = pl.BlockSpec((tm_eff, dim), lambda i, h: (i, 0), **io_kwargs)

    cost = pl.CostEstimate(
        flops=6 * Mp * dim * hidden_p,
        transcendentals=Mp * hidden_p,
        bytes_accessed=3 * hidden_p * dim * wb * grid[0] + 2 * Mp * dim * xb,
    )

    out = pl.pallas_call(
        _swiglu_kernel,
        out_shape=jax.ShapeDtypeStruct((Mp, dim), x.dtype),
        grid_spec=pltpu.PrefetchScalarGridSpec(
            num_scalar_prefetch=0,
            grid=grid,
            in_specs=[
                x_spec,                                              # x
                pl.BlockSpec((tn_eff, dim), lambda i, h: (h, 0)),    # W1 rows
                pl.BlockSpec((tn_eff, dim), lambda i, h: (h, 0)),    # W3 rows
                pl.BlockSpec((dim, tn_eff), lambda i, h: (0, h)),    # W2 cols
            ],
            out_specs=out_spec,
            scratch_shapes=[pltpu.VMEM((tm_eff, dim), jnp.float32)],
        ),
        compiler_params=pltpu.CompilerParams(
            dimension_semantics=("parallel", "arbitrary"),
            vmem_limit_bytes=int(vmem_limit),
        ),
        cost_estimate=cost,
    )(x2d, w1, w3, w2)

    return out[:M].reshape(orig_shape)


def reference_swiglu_mlp(x, w1, w3, w2):
    x32 = x.astype(jnp.float32)
    h = jnp.einsum("...d,hd->...h", x32, w1.astype(jnp.float32))
    g = jnp.einsum("...d,hd->...h", x32, w3.astype(jnp.float32))
    act = (h * jax.nn.sigmoid(h)) * g
    return jnp.einsum("...h,dh->...d", act, w2.astype(jnp.float32))


if __name__ == "__main__":
    key = jax.random.PRNGKey(0)

    def run_case(case_key, B, S, dim, hidden, dtype, atol, rtol, rel_tol):
        kx, k1, k3, k2 = jax.random.split(case_key, 4)
        x = jax.random.normal(kx, (B, S, dim), jnp.float32).astype(dtype)
        w1 = (jax.random.normal(k1, (hidden, dim), jnp.float32) * 0.05).astype(dtype)
        w3 = (jax.random.normal(k3, (hidden, dim), jnp.float32) * 0.05).astype(dtype)
        w2 = (jax.random.normal(k2, (dim, hidden), jnp.float32) * 0.05).astype(dtype)

        out = jax.block_until_ready(liger_swiglu_mlp(x, w1, w3, w2))
        assert out.shape == (B, S, dim) and out.dtype == dtype

        ref = reference_swiglu_mlp(x, w1, w3, w2)
        o32 = out.astype(jnp.float32)
        r32 = ref.astype(jnp.float32)
        rel = float(jnp.linalg.norm(o32 - r32) / (jnp.linalg.norm(r32) + 1e-9))
        ok = bool(jnp.allclose(o32, r32, atol=atol, rtol=rtol)) and rel < rel_tol
        assert ok, f"mismatch vs reference (relative L2 error {rel:.3e})"

    keys = jax.random.split(key, 3)
    # f32: exercises token-tile padding (M=14) + 2-step hidden accumulation.
    run_case(keys[0], 2, 7, 256, 1024, jnp.float32, 3e-2, 3e-2, 2e-2)
    # bf16: MXU in bf16, f32 accumulation, bf16 downcast of act before W2.
    run_case(keys[1], 2, 9, 128, 512, jnp.bfloat16, 6e-2, 6e-2, 4e-2)
    # Ragged hidden (not a multiple of 128): padded-hidden fallback path.
    run_case(keys[2], 1, 5, 128, 200, jnp.float32, 3e-2, 3e-2, 2e-2)

    print("KERNEL_OK")
</pallas_src>

<mosaic_0001>
module attributes {stable_mosaic.version = 11 : i64} {
  func.func @_swiglu_kernel(%arg0: i32, %arg1: i32, %arg2: memref<16x256xf32, #tpu.memory_space<vmem>>, %arg3: memref<512x256xf32, #tpu.memory_space<vmem>>, %arg4: memref<512x256xf32, #tpu.memory_space<vmem>>, %arg5: memref<256x512xf32, #tpu.memory_space<vmem>>, %arg6: memref<16x256xf32, #tpu.memory_space<vmem>>, %arg7: memref<16x256xf32, #tpu.memory_space<vmem>>) attributes {dimension_semantics = [#tpu.dimension_semantics<parallel>, #tpu.dimension_semantics<arbitrary>], iteration_bounds = array<i64: 1, 2>, scalar_prefetch = 0 : i64, scratch_operands = 1 : i64, tpu.core_type = #tpu.core_type<tc>, window_params = [{transform_indices = @transform_0, window_bounds = array<i64: 16, 256>}, {transform_indices = @transform_1, window_bounds = array<i64: 512, 256>}, {transform_indices = @transform_2, window_bounds = array<i64: 512, 256>}, {transform_indices = @transform_3, window_bounds = array<i64: 256, 512>}, {transform_indices = @transform_4, window_bounds = array<i64: 16, 256>}]} {
    %c0_i32 = arith.constant 0 : i32
    %0 = arith.cmpi eq, %arg1, %c0_i32 : i32
    %1 = arith.extui %0 : i1 to i32
    %c0_i32_0 = arith.constant 0 : i32
    %2 = arith.cmpi ne, %1, %c0_i32_0 : i32
    scf.if %2 {
      %cst_17 = arith.constant 0.000000e+00 : f32
      %24 = vector.broadcast %cst_17 : f32 to vector<16x256xf32>
      %c0_18 = arith.constant 0 : index
      %c0_19 = arith.constant 0 : index
      %25 = vector.load %arg7[%c0_18, %c0_19] : memref<16x256xf32, #tpu.memory_space<vmem>>, vector<16x256xf32>
      tpu.vector_store %arg7[%c0_18, %c0_19], %24 {strides = array<i32>} : memref<16x256xf32, #tpu.memory_space<vmem>>, vector<16x256xf32>,
    } else {
    }
    %c0 = arith.constant 0 : index
    %c0_1 = arith.constant 0 : index
    %3 = vector.load %arg2[%c0, %c0_1] : memref<16x256xf32, #tpu.memory_space<vmem>>, vector<16x256xf32>
    %c0_2 = arith.constant 0 : index
    %c0_3 = arith.constant 0 : index
    %4 = vector.load %arg3[%c0_2, %c0_3] : memref<512x256xf32, #tpu.memory_space<vmem>>, vector<512x256xf32>
    %cst = arith.constant dense<0.000000e+00> : vector<16x512xf32>
    %5 = tpu.matmul %3, %4, %cst {dimension_numbers = #tpu.dot_dimension_numbers<[1], [1], [0], [0], [0, 0, 1, 0], [], []>} : vector<16x256xf32>, vector<512x256xf32>, vector<16x512xf32> -> vector<16x512xf32>
    %c0_4 = arith.constant 0 : index
    %c0_5 = arith.constant 0 : index
    %6 = vector.load %arg4[%c0_4, %c0_5] : memref<512x256xf32, #tpu.memory_space<vmem>>, vector<512x256xf32>
    %cst_6 = arith.constant dense<0.000000e+00> : vector<16x512xf32>
    %7 = tpu.matmul %3, %6, %cst_6 {dimension_numbers = #tpu.dot_dimension_numbers<[1], [1], [0], [0], [0, 0, 1, 0], [], []>} : vector<16x256xf32>, vector<512x256xf32>, vector<16x512xf32> -> vector<16x512xf32>
    %cst_7 = arith.constant 0.000000e+00 : f32
    %8 = vector.broadcast %cst_7 : f32 to vector<16x512xf32>
    %9 = arith.subf %8, %5 : vector<16x512xf32>
    %10 = math.exp %9 : vector<16x512xf32>
    %cst_8 = arith.constant 1.000000e+00 : f32
    %11 = vector.broadcast %cst_8 : f32 to vector<16x512xf32>
    %12 = arith.addf %11, %10 : vector<16x512xf32>
    %13 = tpu.reciprocal %12 {approx = true} : vector<16x512xf32> -> vector<16x512xf32>
    %14 = arith.mulf %5, %13 : vector<16x512xf32>
    %15 = arith.mulf %14, %7 : vector<16x512xf32>
    %c0_9 = arith.constant 0 : index
    %c0_10 = arith.constant 0 : index
    %16 = vector.load %arg7[%c0_9, %c0_10] : memref<16x256xf32, #tpu.memory_space<vmem>>, vector<16x256xf32>
    %c0_11 = arith.constant 0 : index
    %c0_12 = arith.constant 0 : index
    %17 = vector.load %arg5[%c0_11, %c0_12] : memref<256x512xf32, #tpu.memory_space<vmem>>, vector<256x512xf32>
    %cst_13 = arith.constant dense<0.000000e+00> : vector<16x256xf32>
    %18 = tpu.matmul %15, %17, %cst_13 {dimension_numbers = #tpu.dot_dimension_numbers<[1], [1], [0], [0], [0, 0, 1, 0], [], []>} : vector<16x512xf32>, vector<256x512xf32>, vector<16x256xf32> -> vector<16x256xf32>
    %19 = arith.addf %16, %18 : vector<16x256xf32>
    %c0_14 = arith.constant 0 : index
    %c0_15 = arith.constant 0 : index
    %20 = vector.load %arg7[%c0_14, %c0_15] : memref<16x256xf32, #tpu.memory_space<vmem>>, vector<16x256xf32>
    tpu.vector_store %arg7[%c0_14, %c0_15], %19 {strides = array<i32>} : memref<16x256xf32, #tpu.memory_space<vmem>>, vector<16x256xf32>,
    %c1_i32 = arith.constant 1 : i32
    %21 = arith.cmpi eq, %arg1, %c1_i32 : i32
    %22 = arith.extui %21 : i1 to i32
    %c0_i32_16 = arith.constant 0 : i32
    %23 = arith.cmpi ne, %22, %c0_i32_16 : i32
    scf.if %23 {
      %c0_17 = arith.constant 0 : index
      %c0_18 = arith.constant 0 : index
      %24 = vector.load %arg7[%c0_17, %c0_18] : memref<16x256xf32, #tpu.memory_space<vmem>>, vector<16x256xf32>
      %c0_19 = arith.constant 0 : index
      %c0_20 = arith.constant 0 : index
      %25 = vector.load %arg6[%c0_19, %c0_20] : memref<16x256xf32, #tpu.memory_space<vmem>>, vector<16x256xf32>
      tpu.vector_store %arg6[%c0_19, %c0_20], %24 {strides = array<i32>} : memref<16x256xf32, #tpu.memory_space<vmem>>, vector<16x256xf32>,
    } else {
    }
    return
  }
  func.func @transform_0(%arg0: i32, %arg1: i32) -> (i32, i32) {
    %c0_i32 = arith.constant 0 : i32
    %c0_i32_0 = arith.constant 0 : i32
    return %arg0, %c0_i32 : i32, i32
  }
  func.func @transform_1(%arg0: i32, %arg1: i32) -> (i32, i32) {
    %c0_i32 = arith.constant 0 : i32
    %c0_i32_0 = arith.constant 0 : i32
    return %arg1, %c0_i32 : i32, i32
  }
  func.func @transform_2(%arg0: i32, %arg1: i32) -> (i32, i32) {
    %c0_i32 = arith.constant 0 : i32
    %c0_i32_0 = arith.constant 0 : i32
    return %arg1, %c0_i32 : i32, i32
  }
  func.func @transform_3(%arg0: i32, %arg1: i32) -> (i32, i32) {
    %c0_i32 = arith.constant 0 : i32
    %c0_i32_0 = arith.constant 0 : i32
    return %c0_i32, %arg1 : i32, i32
  }
  func.func @transform_4(%arg0: i32, %arg1: i32) -> (i32, i32) {
    %c0_i32 = arith.constant 0 : i32
    %c0_i32_0 = arith.constant 0 : i32
    return %arg0, %c0_i32 : i32, i32
  }
}

</mosaic_0001>

<bundles_post_ra>
// kernel: tpu_custom_call.1
= control target key start
LH: loop header
LB: loop body
LE: loop exit
PB: predicated region body
PF: predicated region fallthrough
CT: control target
= control target key end

     0   :  { %s2896_s0 = inlined_call_operand.hbm [shape: f32[16,256], index: 0, kind: input, shape index: {}]   ;;  %s2897_s1 = inlined_call_operand.hbm [shape: f32[1024,256], index: 1, kind: input, shape index: {}]   ;;  %s2898_s2 = inlined_call_operand.hbm [shape: f32[1024,256], index: 2, kind: input, shape index: {}]   ;;  %s2899_s3 = inlined_call_operand.hbm [shape: f32[256,1024], index: 3, kind: input, shape index: {}]   ;;  %s2900_s4 = inlined_call_operand.hbm [shape: f32[16,256], index: 4, kind: output, shape index: {}]  }
   0x1   :  { %2911 = sst [smem:[#allocation16_spill]] %s2897_s1 }
   0x2   :  { %2912 = sst [smem:[#allocation17_spill]] %s2898_s2 }
   0x3   :  { %9 = vsyncpa [#allocation4], 0 }
   0x4   :  { %10 = vsyncpa [#allocation7], 0 }
   0x5   :  { %12 = vsyncpa [#allocation7 + $0x1], 0 }
   0x6   :  { %13 = vsyncpa [#allocation10], 0 }
   0x7   :  { %15 = vsyncpa [#allocation10 + $0x1], 0 }
   0x8   :  { %16 = vsyncpa [#allocation5], 0  ;;  %s2186_s15 = smov 0   ;;  %s2188_s16 = smov 0  }
   0x9   :  { %s2190_s17 = smov 0   ;;  %s2192_s18 = smov 0  }
   0xa   :  { %s2194_s19 = smov 0   ;;  %s2196_s20 = smov 0  }
   0xb LB: > { %s31_s21 = sadd.s32 1, %s2142_s19  ;;  %s67_s22 = sadd.s32 1, %s2134_s17  ;;  %s2146_s20 = sphi %s2196_s20, %s22_s20   ;;  %s2142_s19 = sphi %s2194_s19, %s2934_s19   ;;  %s2138_s18 = sphi %s2192_s18, %s2933_s18   ;;  %s2134_s17 = sphi %s2190_s17, %s2932_s17   ;;  %s2130_s16 = sphi %s2188_s16, %s2931_s16   ;;  %s2126_s15 = sphi %s2186_s15, %s2930_s15  }
   0xc   : > { %p32_p0 = scmp.ge.s32.totalorder %s31_s21, 2  ;;  %p74_p1 = scmp.ne.s32.totalorder %s2134_s17, %s2130_s16 }
   0xd   : > { %p75_p2 = scmp.eq.s32.totalorder %s2146_s20, 0  ;;  %p1846_p5 = scmp.lt.s32.totalorder %s2146_s20, 2 }
   0xe   : > { %s2936_s21 = smov (%p32_p0, %s31_s21), 0  ;;  %s199_s25 = sand.u32 1, %s2146_s20  }
   0xf   : > { %p2223_p3 = por %p75_p2, %p74_p1  ;;  %s64_s24 = ssub.s32 %s2142_s19, %s2936_s21 }
  0x10   : > { %p65_p4 = scmp.eq.s32.totalorder %s64_s24, 0  ;;  %s2901_s26 = sand.u32 1, %s2134_s17  }
  0x11   : > { %s2237_s28 = sshll.u32 %s2901_s26, 10  ;;  %s1425_s29 = sshll.u32 %s2142_s19, 14 }
  0x12   : > { %s2233_s27 = scalar_select %p65_p4, %s2134_s17, %s67_s22  }
  0x13   : > { %s2914_s1 = sld [smem:[#allocation16_spill]]  ;;  %s203_s7 = scalar_lea.vmem [#allocation6], %s2237_s28 }
  0x14   : > { %s211_s8 = sshll.u32 %s203_s7, 4  ;;  %p2250_p6 = pnand %p1846_p5, %p2223_p3  ;;  %s2246_s8 = int_to_ptr.vmem [resolvable:$true] %s211_s8 }
  0x15   : > { %s2916_s2 = sld [smem:[#allocation17_spill]]  ;;  %s2259_s13 = scalar_lea.sflag [#allocation7], %s199_s25 }
  0x16   : > { %s2915_s9 = scalar_select %p2250_p6, 1, 0 }
  0x17   : > { %p2265_p8 = pneg %p2250_p6 }
  0x19   : > { %s2243_s6 = scalar_lea.hbm %s2914_s1, %s1425_s29  ;;  %s1945_s30 = scalar_lea.hbm %s2914_s1, 32768 }
  0x1a   : > { %s1940_s14 = scalar_lea.hbm %s2243_s6, 16384  ;;  %p1946_p11 = scmp.lt.u32.totalorder %s2243_s6, %s2914_s1 }
  0x1b   : > { %s2257_s12 = scalar_lea.hbm %s2916_s2, %s1425_s29  ;;  %p1941_p7 = scmp.ne.s32.totalorder %s2243_s6, %s1940_s14 }
  0x1c   : > { %s2917_s22 = scalar_select %p2265_p8, 1, 0 }
  0x1d   : > { %p1943_p9 = pnand %p2265_p8, %p1941_p7  ;;  %p1947_p12 = scmp.lt.u32.totalorder %s1945_s30, %s1940_s14 }
  0x1e   : > { %p1949_p0 = scmp.lt.u32.totalorder %s1940_s14, %s2243_s6 }
  0x1f   : > { %p1944_p10 = pneg %p1943_p9  ;;  %p1948_p13 = por %p1947_p12, %p1946_p11 }
  0x21   : > { %p1950_p1 = por %p1949_p0, %p1948_p13 }
  0x23   : > { %p1951_p2 = pnand %p1950_p1, %p1944_p10 }
  0x25   : > { %1954 = shalt.err (!%p1951_p2)
}
  0x26   : > { %s1955_s25 = scalar_lea.vmem %s2246_s8, 16384  ;;  %s2148_s7 = smov [#allocation6]  }
  0x27   : > { %p1956_p3 = scmp.ne.s32.totalorder %s2246_s8, %s1955_s25  ;;  %s1960_s10 = sshll.u32 %s2148_s7, 4  ;;  %s1961_s10 = int_to_ptr.vmem [resolvable:$false] %s1960_s10 }
  0x28   : > { %s1962_s11 = scalar_lea.vmem %s1961_s10, 32768  ;;  %p1963_p7 = scmp.lt.s32.totalorder %s2246_s8, %s1961_s10 }
  0x29   : > { %p1958_p4 = pnand %p1956_p3, %p2265_p8  ;;  %p1964_p9 = scmp.lt.s32.totalorder %s1962_s11, %s1955_s25 }
  0x2b   : > { %p1959_p5 = pneg %p1958_p4  ;;  %p1965_p11 = por %p1964_p9, %p1963_p7 }
  0x2d   : > { %p1966_p12 = pnand %p1965_p11, %p1959_p5 }
  0x2f   : > { %1969 = shalt.err (!%p1966_p12)
}
  0x30   : > { %s2902_s14 = smov 256   ;;  %s2150_s23 = smov 16  }
  0x31   : > { %1838 = dma.hbm_to_vmem [thread:$0]  (!%p2250_p6), %s2243_s6, 16384, %s2246_s8, %s2259_s13, %s2902_s14, %s2902_s14, %s2150_s23  }
  0x32   : > { %s2293_s24 = sadd.s32 4294967295, %s2146_s20   ;;  %p80_p10 = scmp.ne.s32.totalorder %s2130_s16, %s2126_s15 }
  0x33   : > { %p2904_p13 = scmp.eq.s32.totalorder %s2293_s24, 0  ;;  %p1399_p0 = scmp.ge.s32.totalorder %s2146_s20, 1 }
  0x34   : > { %p169_p1 = scmp.lt.s32.totalorder %s2146_s20, 3  ;;  %s2151_s8 = smov [#allocation3]  }
  0x35   : > { %p2302_p2 = por %p2904_p13, %p80_p10  ;;  %s185_s5 = sshll.u32 %s2151_s8, 4  ;;  %s2310_s5 = int_to_ptr.vmem [resolvable:$true] %s185_s5 }
  0x36   : > { %p2306_p3 = pnand %p1399_p0, %p169_p1  ;;  %s225_s15 = scalar_lea.vmem [#allocation8], %s2237_s28 }
  0x37   : > { %s2918_s30 = scalar_select %p2302_p2, 1, 0 }
  0x38   : > { %s2919_s6 = scalar_select %p2306_p3, 1, 0 }
  0x39   : > { %p1831_p4 = pneg %p2306_p3  ;;  %s233_s29 = sshll.u32 %s225_s15, 4  ;;  %s2315_s29 = int_to_ptr.vmem [resolvable:$true] %s233_s29 }
  0x3a   : > { %s1970_s7 = scalar_lea.hbm %s2257_s12, 16384  ;;  %s1975_s8 = scalar_lea.hbm %s2916_s2, 32768 }
  0x3b   : > { %p2319_p5 = pnand %p1831_p4, %p2904_p13  ;;  %p1971_p7 = scmp.ne.s32.totalorder %s2257_s12, %s1970_s7 }
  0x3c   : > { %p1976_p12 = scmp.lt.u32.totalorder %s2257_s12, %s2916_s2  ;;  %p1977_p10 = scmp.lt.u32.totalorder %s1975_s8, %s1970_s7 }
  0x3d   : > { %s2920_s25 = scalar_select %p2319_p5, 1, 0 }
  0x3e   : > { %p1973_p9 = pnand %p1971_p7, %p2265_p8  ;;  %p1978_p0 = por %p1977_p10, %p1976_p12 }
  0x3f   : > { %p1979_p1 = scmp.lt.u32.totalorder %s1970_s7, %s2257_s12 }
  0x40   : > { %p1974_p11 = pneg %p1973_p9 }
  0x41   : > { %p1980_p4 = por %p1979_p1, %p1978_p0 }
  0x43   : > { %p1981_p13 = pnand %p1980_p4, %p1974_p11 }
  0x45   : > { %1984 = shalt.err (!%p1981_p13)
}
  0x46   : > { %s1985_s15 = scalar_lea.vmem %s2315_s29, 16384  ;;  %s2152_s10 = smov [#allocation8]  }
  0x47   : > { %p1986_p7 = scmp.ne.s32.totalorder %s2315_s29, %s1985_s15  ;;  %s1990_s11 = sshll.u32 %s2152_s10, 4  ;;  %s1991_s11 = int_to_ptr.vmem [resolvable:$false] %s1990_s11 }
  0x48   : > { %s1992_s26 = scalar_lea.vmem %s1991_s11, 32768  ;;  %p1993_p3 = scmp.lt.s32.totalorder %s2315_s29, %s1991_s11 }
  0x49   : > { %p1988_p9 = pnand %p1986_p7, %p2265_p8  ;;  %p1994_p5 = scmp.lt.s32.totalorder %s1992_s26, %s1985_s15 }
  0x4b   : > { %p1989_p2 = pneg %p1988_p9  ;;  %p1995_p12 = por %p1994_p5, %p1993_p3 }
  0x4d   : > { %p1996_p10 = pnand %p1995_p12, %p1989_p2 }
  0x4f   : > { %1999 = shalt.err (!%p1996_p10)
}
  0x50   : > { %s2921_s14 = smov 256   ;;  %s1428_s7 = sshll.u32 %s2142_s19, 9 }
  0x51   : > { %1841 = dma.hbm_to_vmem [thread:$0]  (!%p2250_p6), %s2257_s12, 16384, %s2315_s29, %s2259_s13, %s2921_s14, %s2921_s14, %s2150_s23  }
  0x52   : > { %s2000_s11 = scalar_lea.hbm %s2896_s0, 512  ;;  %p2922_p2 = scmp.ne.s32.totalorder %s2920_s25, 0 }
  0x53   : > { %p2001_p13 = scmp.ne.s32.totalorder %s2896_s0, %s2000_s11  ;;  %p2007_p0 = scmp.lt.u32.totalorder %s2000_s11, %s2896_s0 }
  0x54   : > { %p2002_p3 = pneg %p2922_p2 }
  0x56   : > { %p2003_p5 = pnand %p2002_p3, %p2001_p13 }
  0x58   : > { %p2004_p11 = pneg %p2003_p5 }
  0x5a   : > { %p2009_p1 = pnand %p2007_p0, %p2004_p11 }
  0x5c   : > { %2012 = shalt.err (!%p2009_p1)
}
  0x5d   : > { %s2013_s12 = scalar_lea.vmem %s2310_s5, 512  ;;  %p2021_p12 = scmp.lt.s32.totalorder %s2310_s5, %s2310_s5 }
  0x5e   : > { %p2014_p4 = scmp.ne.s32.totalorder %s2310_s5, %s2013_s12  ;;  %p2022_p10 = scmp.lt.s32.totalorder %s2013_s12, %s2013_s12 }
  0x60   : > { %p2016_p7 = pnand %p2014_p4, %p2002_p3  ;;  %p2023_p6 = por %p2022_p10, %p2021_p12 }
  0x62   : > { %p2017_p9 = pneg %p2016_p7 }
  0x64   : > { %p2024_p8 = pnand %p2023_p6, %p2017_p9 }
  0x66   : > { %2027 = shalt.err (!%p2024_p8)
}
  0x67   : > { %1834 = dma.hbm_to_vmem [thread:$0]  (!%p2922_p2), %s2896_s0, 512, %s2310_s5, [#allocation4], %s2921_s14, %s2921_s14, %s2150_s23  }
  0x68   : > { %s2376_s8 = scalar_lea.hbm %s2899_s3, %s1428_s7  ;;  %s247_s25 = scalar_lea.vmem [#allocation9], %s2237_s28 }
  0x69   : > { %s254_s10 = sshll.u32 %s247_s25, 4  ;;  %s2923_s11 = sand.u32 1, %s2134_s17   ;;  %s2379_s10 = int_to_ptr.vmem [resolvable:$true] %s254_s10 }
  0x6a   : > { %s2383_s15 = scalar_lea.sflag [#allocation10], %s2923_s11  ;;  %s2028_s26 = scalar_lea.hbm %s2376_s8, 16384 }
  0x6b   : > { %p2029_p6 = scmp.ne.s32.totalorder %s2376_s8, %s2028_s26  ;;  %p2924_p8 = scmp.ne.s32.totalorder %s2917_s22, 0 }
  0x6c   : > { %s2033_s14 = scalar_lea.hbm %s2899_s3, 32768  ;;  %p2034_p3 = scmp.lt.u32.totalorder %s2376_s8, %s2899_s3 }
  0x6d   : > { %p2031_p13 = pnand %p2029_p6, %p2924_p8  ;;  %p2035_p5 = scmp.lt.u32.totalorder %s2033_s14, %s2028_s26 }
  0x6e   : > { %p2037_p0 = scmp.lt.u32.totalorder %s2028_s26, %s2376_s8 }
  0x6f   : > { %p2032_p2 = pneg %p2031_p13  ;;  %p2036_p11 = por %p2035_p5, %p2034_p3 }
  0x71   : > { %p2038_p1 = por %p2037_p0, %p2036_p11 }
  0x73   : > { %p2039_p4 = pnand %p2038_p1, %p2032_p2 }
  0x75   : > { %2042 = shalt.err (!%p2039_p4)
}
  0x76   : > { %s2043_s28 = scalar_lea.vmem %s2379_s10, 16384  ;;  %s2153_s1 = smov [#allocation9]  }
  0x77   : > { %p2044_p7 = scmp.ne.s32.totalorder %s2379_s10, %s2043_s28  ;;  %s2048_s2 = sshll.u32 %s2153_s1, 4  ;;  %s2049_s2 = int_to_ptr.vmem [resolvable:$false] %s2048_s2 }
  0x78   : > { %s2050_s13 = scalar_lea.vmem %s2049_s2, 32768  ;;  %p2051_p10 = scmp.lt.s32.totalorder %s2379_s10, %s2049_s2 }
  0x79   : > { %p2046_p9 = pnand %p2044_p7, %p2924_p8  ;;  %p2052_p6 = scmp.lt.s32.totalorder %s2050_s13, %s2043_s28 }
  0x7b   : > { %p2047_p12 = pneg %p2046_p9  ;;  %p2053_p13 = por %p2052_p6, %p2051_p10 }
  0x7d   : > { %p2054_p3 = pnand %p2053_p13, %p2047_p12 }
  0x7f   : > { %2057 = shalt.err (!%p2054_p3)
}
  0x80   : > { %s2154_s29 = smov 1024   ;;  %s2155_s25 = smov 512  }
  0x81   : > { %s2156_s11 = smov 32   ;;  %p2925_p2 = scmp.ne.s32.totalorder %s2915_s9, 0 }
  0x82   : > { %p2926_p8 = scmp.ne.s32.totalorder %s2919_s6, 0 }
  0x83   : > { %1844 = dma.hbm_to_vmem [thread:$0]  (!%p2925_p2), %s2376_s8, 16384, %s2379_s10, %s2383_s15, %s2154_s29, %s2155_s25, %s2156_s11  }
  0x84   : > { %266 = sbr.rel (%p2926_p8) target bundleno = 1014 (0x3f6), region = 36  ;;  %p2927_p5 = scmp.eq.s32.totalorder (!%p2926_p8), %s2293_s24, 0 }
  0x8b   : > { %2109 = dma.done.wait (%p2927_p5), [#allocation4], 512   ;;  %p2928_p11 = pmov %p2927_p5 }
  0x8c   : > { %s272_s22 = sand.u32 1, %s2293_s24   ;;  %s274_s26 = sand.u32 1, %s2130_s16  }
  0x8d   : > { %2111 = vsyncadd (%p2928_p11), [#allocation4], 4294966784  ;;  %s1415_s23 = sshll.u32 %s274_s26, 10  ;;  %s273_s5 = scalar_lea.sflag [#allocation7], %s272_s22 }
  0x8e   : > { %s2415_s14 = scalar_lea.vmem [#allocation6], %s1415_s23  ;;  %p2929_p0 = scmp.ne.s32.totalorder %s2918_s30, 0 }
  0x90   : > { %2113 = dma.done.wait (%p2929_p0), %s273_s5, 32768  }
  0x91   : > { %2115 = vsyncadd (%p2929_p0), %s273_s5, 4294934528  ;;  %s2421_s9 = scalar_lea.vmem [#allocation8], %s1415_s23  ;;  %s291_s6 = scalar_lea.sflag [#allocation10], %s274_s26 }
  0x92   : > { %s2423_s8 = scalar_lea.vmem [#allocation9], %s1415_s23 }
  0x93   : > { %2117 = dma.done.wait (%p2929_p0), %s291_s6, 16384  }
  0x94   : > { %2119 = vsyncadd (%p2929_p0), %s291_s6, 4294950912  ;;  %p1418_p1 = scmp.ne.s32.totalorder %s2138_s18, 0 }
  0x95   : > { %v2157_v0 = vmov (!%p1418_p1), 0.0  }
  0x96   : > { %332 = sbr.rel (%p1418_p1) target bundleno = 157 (0x9d), region = 56  ;;  %333 = vst [vmem:[#allocation2] sm:$0xff] (!%p1418_p1), %v2157_v0  ;;  %334 = vst [vmem:[#allocation2 + $0x8] sm:$0xff] (!%p1418_p1), %v2157_v0 }
  0x97   : > { %335 = vst [vmem:[#allocation2 + $0x10] sm:$0xff] (!%p1418_p1), %v2157_v0  ;;  %336 = vst [vmem:[#allocation2 + $0x18] sm:$0xff] (!%p1418_p1), %v2157_v0 }
  0x9d PF: > { %v342_v1 = vld [vmem:[%s2415_s14 + $0x8] sm:$0xff]  ;;  %v344_v2 = vld [vmem:[%s2415_s14 + $0x18] sm:$0xff]  ;;  %v341_v3 = vld [vmem:[%s2415_s14] sm:$0xff]  ;;  %p1419_p4 = scmp.ne.s32.totalorder %s2138_s18, 1 }
  0x9e   : > { %v1429_v4 = vpack.c.bf16 %v344_v2, %v342_v1  ;;  %v343_v5 = vld [vmem:[%s2415_s14 + $0x10] sm:$0xff]  ;;  %v346_v6 = vld [vmem:[%s2415_s14 + $0x28] sm:$0xff]  ;;  %v348_v7 = vld [vmem:[%s2415_s14 + $0x38] sm:$0xff] }
  0x9f   : > { %v1431_v8 = vpack.c.bf16 %v343_v5, %v341_v3  ;;  %v1433_v9 = vpack.c.bf16 %v348_v7, %v346_v6  ;;  %v345_v10 = vld [vmem:[%s2415_s14 + $0x20] sm:$0xff]  ;;  %v347_v11 = vld [vmem:[%s2415_s14 + $0x30] sm:$0xff]  ;;  %v350_v12 = vld [vmem:[%s2415_s14 + $0x48] sm:$0xff] }
  0xa0   : > { %1430 = vmatprep.subr.bf16.mxu1 %v1429_v4  ;;  %v624_v13 = vld [vmem:[%s2421_s9 + $0x8] sm:$0xff]  ;;  %v626_v14 = vld [vmem:[%s2421_s9 + $0x18] sm:$0xff]  ;;  %v623_v17 = vld [vmem:[%s2421_s9] sm:$0xff]  ;;  %v1435_v20 = vpack.c.bf16 %v347_v11, %v345_v10 }
  0xa1   : > { %1432 = vmatpush1.bf16.xpose.msra.mxu1 %v1431_v8  ;;  %v352_v15 = vld [vmem:[%s2415_s14 + $0x58] sm:$0xff]  ;;  %v1557_v16 = vpack.c.bf16 %v626_v14, %v624_v13  ;;  %v625_v18 = vld [vmem:[%s2421_s9 + $0x10] sm:$0xff]  ;;  %v628_v21 = vld [vmem:[%s2421_s9 + $0x28] sm:$0xff] }
  0xa2   : > { %1434 = vmatprep.subr.bf16.mxu1 %v1433_v9  ;;  %v1559_v19 = vpack.c.bf16 %v625_v18, %v623_v17  ;;  %v630_v22 = vld [vmem:[%s2421_s9 + $0x38] sm:$0xff]  ;;  %v1437_v23 = vpack.c.bf16 %v352_v15, %v350_v12  ;;  %v627_v25 = vld [vmem:[%s2421_s9 + $0x20] sm:$0xff]  ;;  %v629_v26 = vld [vmem:[%s2421_s9 + $0x30] sm:$0xff] }
  0xa3   : > { %1558 = vmatprep.subr.bf16.mxu0 %v1557_v16  ;;  %v1561_v24 = vpack.c.bf16 %v630_v22, %v628_v21  ;;  %v632_v27 = vld [vmem:[%s2421_s9 + $0x48] sm:$0xff]  ;;  %v634_v28 = vld [vmem:[%s2421_s9 + $0x58] sm:$0xff]  ;;  %v349_v29 = vld [vmem:[%s2415_s14 + $0x40] sm:$0xff]  ;;  %v1563_v31 = vpack.c.bf16 %v629_v26, %v627_v25 }
  0xa4   : > { %1560 = vmatpush1.bf16.xpose.msra.mxu0 %v1559_v19  ;;  %v351_v30 = vld [vmem:[%s2415_s14 + $0x50] sm:$0xff]  ;;  %v354_v32 = vld [vmem:[%s2415_s14 + $0x68] sm:$0xff]  ;;  %v356_v33 = vld [vmem:[%s2415_s14 + $0x78] sm:$0xff]  ;;  %v1565_v34 = vpack.c.bf16 %v634_v28, %v632_v27 }
  0xa5   : > { %1562 = vmatprep.subr.bf16.mxu0 %v1561_v24  ;;  %v1439_v35 = vpack.c.bf16 %v351_v30, %v349_v29  ;;  %v1441_v36 = vpack.c.bf16 %v356_v33, %v354_v32  ;;  %v631_v37 = vld [vmem:[%s2421_s9 + $0x40] sm:$0xff]  ;;  %v633_v38 = vld [vmem:[%s2421_s9 + $0x50] sm:$0xff]  ;;  %v636_v39 = vld [vmem:[%s2421_s9 + $0x68] sm:$0xff] }
  0xa6   : > { %v638_v40 = vld [vmem:[%s2421_s9 + $0x78] sm:$0xff]  ;;  %v353_v41 = vld [vmem:[%s2415_s14 + $0x60] sm:$0xff]  ;;  %v355_v42 = vld [vmem:[%s2415_s14 + $0x70] sm:$0xff]  ;;  %v1567_v43 = vpack.c.bf16 %v633_v38, %v631_v37 }
  0xa7   : > { %v358_v44 = vld [vmem:[%s2415_s14 + $0x88] sm:$0xff]  ;;  %v360_v45 = vld [vmem:[%s2415_s14 + $0x98] sm:$0xff]  ;;  %v1569_v46 = vpack.c.bf16 %v638_v40, %v636_v39  ;;  %v1443_v47 = vpack.c.bf16 %v355_v42, %v353_v41  ;;  %v635_v49 = vld [vmem:[%s2421_s9 + $0x60] sm:$0xff] }
  0xa8   : > { %v1445_v48 = vpack.c.bf16 %v360_v45, %v358_v44  ;;  %v637_v50 = vld [vmem:[%s2421_s9 + $0x70] sm:$0xff]  ;;  %v640_v51 = vld [vmem:[%s2421_s9 + $0x88] sm:$0xff]  ;;  %v642_v52 = vld [vmem:[%s2421_s9 + $0x98] sm:$0xff] }
  0xa9   : > { %1436 = vmatpush1.bf16.xpose.msra.mxu1 %v1435_v20  ;;  %v357_v53 = vld [vmem:[%s2415_s14 + $0x80] sm:$0xff]  ;;  %v359_v54 = vld [vmem:[%s2415_s14 + $0x90] sm:$0xff]  ;;  %v1571_v55 = vpack.c.bf16 %v637_v50, %v635_v49  ;;  %v362_v56 = vld [vmem:[%s2415_s14 + $0xa8] sm:$0xff]  ;;  %v1573_v58 = vpack.c.bf16 %v642_v52, %v640_v51 }
  0xaa   : > { %1438 = vmatprep.subr.bf16.mxu1 %v1437_v23  ;;  %v364_v57 = vld [vmem:[%s2415_s14 + $0xb8] sm:$0xff]  ;;  %v1447_v59 = vpack.c.bf16 %v359_v54, %v357_v53  ;;  %v639_v61 = vld [vmem:[%s2421_s9 + $0x80] sm:$0xff]  ;;  %v641_v62 = vld [vmem:[%s2421_s9 + $0x90] sm:$0xff] }
  0xab   : > { %v1449_v60 = vpack.c.bf16 %v364_v57, %v362_v56  ;;  %v644_v63 = vld [vmem:[%s2421_s9 + $0xa8] sm:$0xff]  ;;  %v646_v0 = vld [vmem:[%s2421_s9 + $0xb8] sm:$0xff]  ;;  %v361_v1 = vld [vmem:[%s2415_s14 + $0xa0] sm:$0xff]  ;;  %v1575_v3 = vpack.c.bf16 %v641_v62, %v639_v61 }
  0xac   : > { %1564 = vmatpush1.bf16.xpose.msra.mxu0 %v1563_v31  ;;  %v363_v2 = vld [vmem:[%s2415_s14 + $0xb0] sm:$0xff]  ;;  %v366_v4 = vld [vmem:[%s2415_s14 + $0xc8] sm:$0xff]  ;;  %v368_v5 = vld [vmem:[%s2415_s14 + $0xd8] sm:$0xff]  ;;  %v1577_v6 = vpack.c.bf16 %v646_v0, %v644_v63 }
  0xad   : > { %1566 = vmatprep.subr.bf16.mxu0 %v1565_v34  ;;  %v2478_v7 = vld [vmem:[#allocation3 + $0x8] sm:$0xff]  ;;  %v1451_v8 = vpack.c.bf16 %v363_v2, %v361_v1  ;;  %v1453_v9 = vpack.c.bf16 %v368_v5, %v366_v4  ;;  %v643_v10 = vld [vmem:[%s2421_s9 + $0xa0] sm:$0xff]  ;;  %v645_v11 = vld [vmem:[%s2421_s9 + $0xb0] sm:$0xff] }
  0xae   : > { %533 = vmatprep.mubr.f32.mxu1 %v2478_v7  ;;  %815 = vmatprep.mubr.f32.mxu0 %v2478_v7  ;;  %v648_v12 = vld [vmem:[%s2421_s9 + $0xc8] sm:$0xff]  ;;  %v650_v13 = vld [vmem:[%s2421_s9 + $0xd8] sm:$0xff]  ;;  %v365_v14 = vld [vmem:[%s2415_s14 + $0xc0] sm:$0xff]  ;;  %v1579_v16 = vpack.c.bf16 %v645_v11, %v643_v10 }
  0xaf   : > { %v367_v15 = vld [vmem:[%s2415_s14 + $0xd0] sm:$0xff]  ;;  %v370_v17 = vld [vmem:[%s2415_s14 + $0xe8] sm:$0xff]  ;;  %v372_v18 = vld [vmem:[%s2415_s14 + $0xf8] sm:$0xff]  ;;  %v1581_v19 = vpack.c.bf16 %v650_v13, %v648_v12 }
  0xb0   : > { %v1455_v20 = vpack.c.bf16 %v367_v15, %v365_v14  ;;  %v1457_v21 = vpack.c.bf16 %v372_v18, %v370_v17  ;;  %v647_v22 = vld [vmem:[%s2421_s9 + $0xc0] sm:$0xff]  ;;  %v649_v23 = vld [vmem:[%s2421_s9 + $0xd0] sm:$0xff]  ;;  %v652_v24 = vld [vmem:[%s2421_s9 + $0xe8] sm:$0xff] }
  0xb1   : > { %1440 = vmatpush1.bf16.xpose.msra.mxu1 %v1439_v35  ;;  %v654_v25 = vld [vmem:[%s2421_s9 + $0xf8] sm:$0xff]  ;;  %v369_v26 = vld [vmem:[%s2415_s14 + $0xe0] sm:$0xff]  ;;  %v371_v27 = vld [vmem:[%s2415_s14 + $0xf0] sm:$0xff]  ;;  %v1583_v28 = vpack.c.bf16 %v649_v23, %v647_v22 }
  0xb2   : > { %1442 = vmatprep.subr.bf16.mxu1 %v1441_v36  ;;  %v374_v29 = vld [vmem:[%s2415_s14 + $0x108] sm:$0xff]  ;;  %v376_v30 = vld [vmem:[%s2415_s14 + $0x118] sm:$0xff]  ;;  %v1585_v31 = vpack.c.bf16 %v654_v25, %v652_v24  ;;  %v1459_v32 = vpack.c.bf16 %v371_v27, %v369_v26  ;;  %v651_v34 = vld [vmem:[%s2421_s9 + $0xe0] sm:$0xff] }
  0xb3   : > { %v1461_v33 = vpack.c.bf16 %v376_v30, %v374_v29  ;;  %v653_v35 = vld [vmem:[%s2421_s9 + $0xf0] sm:$0xff]  ;;  %v656_v36 = vld [vmem:[%s2421_s9 + $0x108] sm:$0xff]  ;;  %v658_v37 = vld [vmem:[%s2421_s9 + $0x118] sm:$0xff] }
  0xb4   : > { %1568 = vmatpush1.bf16.xpose.msra.mxu0 %v1567_v43  ;;  %v373_v38 = vld [vmem:[%s2415_s14 + $0x100] sm:$0xff]  ;;  %v375_v39 = vld [vmem:[%s2415_s14 + $0x110] sm:$0xff]  ;;  %v1587_v40 = vpack.c.bf16 %v653_v35, %v651_v34  ;;  %v378_v41 = vld [vmem:[%s2415_s14 + $0x128] sm:$0xff]  ;;  %v1589_v43 = vpack.c.bf16 %v658_v37, %v656_v36 }
  0xb5   : > { %1570 = vmatprep.subr.bf16.mxu0 %v1569_v46  ;;  %v380_v42 = vld [vmem:[%s2415_s14 + $0x138] sm:$0xff]  ;;  %v1463_v44 = vpack.c.bf16 %v375_v39, %v373_v38  ;;  %v655_v46 = vld [vmem:[%s2421_s9 + $0x100] sm:$0xff]  ;;  %v379_v51 = vld [vmem:[%s2415_s14 + $0x130] sm:$0xff] }
  0xb6   : > { %v1465_v45 = vpack.c.bf16 %v380_v42, %v378_v41  ;;  %v662_v49 = vld [vmem:[%s2421_s9 + $0x138] sm:$0xff]  ;;  %v377_v50 = vld [vmem:[%s2415_s14 + $0x120] sm:$0xff]  ;;  %v382_v53 = vld [vmem:[%s2415_s14 + $0x148] sm:$0xff] }
  0xb7   : > { %v384_v54 = vld [vmem:[%s2415_s14 + $0x158] sm:$0xff]  ;;  %v1467_v56 = vpack.c.bf16 %v379_v51, %v377_v50  ;;  %v381_v62 = vld [vmem:[%s2415_s14 + $0x140] sm:$0xff]  ;;  %v383_v63 = vld [vmem:[%s2415_s14 + $0x150] sm:$0xff] }
  0xb8   : > { %v1469_v57 = vpack.c.bf16 %v384_v54, %v382_v53  ;;  %v666_v61 = vld [vmem:[%s2421_s9 + $0x158] sm:$0xff]  ;;  %v386_v1 = vld [vmem:[%s2415_s14 + $0x168] sm:$0xff]  ;;  %v1471_v4 = vpack.c.bf16 %v383_v63, %v381_v62  ;;  %v385_v11 = vld [vmem:[%s2415_s14 + $0x160] sm:$0xff] }
  0xb9   : > { %1444 = vmatpush1.bf16.xpose.msra.mxu1 %v1443_v47  ;;  %v657_v47 = vld [vmem:[%s2421_s9 + $0x110] sm:$0xff]  ;;  %v388_v2 = vld [vmem:[%s2415_s14 + $0x178] sm:$0xff]  ;;  %v390_v14 = vld [vmem:[%s2415_s14 + $0x188] sm:$0xff] }
  0xba   : > { %1446 = vmatprep.subr.bf16.mxu1 %v1445_v48  ;;  %v660_v48 = vld [vmem:[%s2421_s9 + $0x128] sm:$0xff]  ;;  %v1591_v52 = vpack.c.bf16 %v657_v47, %v655_v46  ;;  %v1473_v5 = vpack.c.bf16 %v388_v2, %v386_v1  ;;  %v670_v10 = vld [vmem:[%s2421_s9 + $0x178] sm:$0xff]  ;;  %v387_v12 = vld [vmem:[%s2415_s14 + $0x170] sm:$0xff] }
  0xbb   : > { %v392_v15 = vld [vmem:[%s2415_s14 + $0x198] sm:$0xff]  ;;  %v1475_v17 = vpack.c.bf16 %v387_v12, %v385_v11  ;;  %v389_v23 = vld [vmem:[%s2415_s14 + $0x180] sm:$0xff]  ;;  %v391_v24 = vld [vmem:[%s2415_s14 + $0x190] sm:$0xff] }
  0xbc   : > { %1572 = vmatpush1.bf16.xpose.msra.mxu0 %v1571_v55  ;;  %v1593_v55 = vpack.c.bf16 %v662_v49, %v660_v48  ;;  %v1477_v18 = vpack.c.bf16 %v392_v15, %v390_v14  ;;  %v674_v22 = vld [vmem:[%s2421_s9 + $0x198] sm:$0xff]  ;;  %v394_v26 = vld [vmem:[%s2415_s14 + $0x1a8] sm:$0xff]  ;;  %v1479_v29 = vpack.c.bf16 %v391_v24, %v389_v23  ;;  %v393_v35 = vld [vmem:[%s2415_s14 + $0x1a0] sm:$0xff] }
  0xbd   : > { %1574 = vmatprep.subr.bf16.mxu0 %v1573_v58  ;;  %v659_v58 = vld [vmem:[%s2421_s9 + $0x120] sm:$0xff]  ;;  %v396_v27 = vld [vmem:[%s2415_s14 + $0x1b8] sm:$0xff]  ;;  %v395_v36 = vld [vmem:[%s2415_s14 + $0x1b0] sm:$0xff] }
  0xbe   : > { %v1481_v30 = vpack.c.bf16 %v396_v27, %v394_v26  ;;  %v678_v34 = vld [vmem:[%s2421_s9 + $0x1b8] sm:$0xff]  ;;  %v398_v38 = vld [vmem:[%s2415_s14 + $0x1c8] sm:$0xff]  ;;  %v1483_v41 = vpack.c.bf16 %v395_v36, %v393_v35  ;;  %v397_v47 = vld [vmem:[%s2415_s14 + $0x1c0] sm:$0xff] }
  0xbf   : > { %v400_v39 = vld [vmem:[%s2415_s14 + $0x1d8] sm:$0xff]  ;;  %v399_v48 = vld [vmem:[%s2415_s14 + $0x1d0] sm:$0xff]  ;;  %v402_v50 = vld [vmem:[%s2415_s14 + $0x1e8] sm:$0xff] }
  0xc0   : > { %v1485_v42 = vpack.c.bf16 %v400_v39, %v398_v38  ;;  %v682_v46 = vld [vmem:[%s2421_s9 + $0x1d8] sm:$0xff]  ;;  %v1487_v53 = vpack.c.bf16 %v399_v48, %v397_v47  ;;  %v406_v62 = vld [vmem:[%s2415_s14 + $0x208] sm:$0xff]  ;;  %v2570_v14 = vld [vmem:[#allocation3] sm:$0xff] }
  0xc1   : > { %1448 = vmatpush1.bf16.xpose.msra.mxu1 %v1447_v59  ;;  %v661_v59 = vld [vmem:[%s2421_s9 + $0x130] sm:$0xff]  ;;  %v404_v51 = vld [vmem:[%s2415_s14 + $0x1f8] sm:$0xff]  ;;  %v410_v11 = vld [vmem:[%s2415_s14 + $0x228] sm:$0xff] }
  0xc2   : > { %1450 = vmatprep.subr.bf16.mxu1 %v1449_v60  ;;  %v664_v60 = vld [vmem:[%s2421_s9 + $0x148] sm:$0xff]  ;;  %v1595_v0 = vpack.c.bf16 %v661_v59, %v659_v58  ;;  %v1489_v54 = vpack.c.bf16 %v404_v51, %v402_v50  ;;  %v686_v58 = vld [vmem:[%s2421_s9 + $0x1f8] sm:$0xff]  ;;  %v401_v59 = vld [vmem:[%s2415_s14 + $0x1e0] sm:$0xff] }
  0xc3   : > { %v408_v63 = vld [vmem:[%s2415_s14 + $0x218] sm:$0xff]  ;;  %v409_v23 = vld [vmem:[%s2415_s14 + $0x220] sm:$0xff]  ;;  %v411_v24 = vld [vmem:[%s2415_s14 + $0x230] sm:$0xff] }
  0xc4   : > { %1576 = vmatpush1.bf16.xpose.msra.mxu0 %v1575_v3  ;;  %v1597_v3 = vpack.c.bf16 %v666_v61, %v664_v60  ;;  %v403_v60 = vld [vmem:[%s2415_s14 + $0x1f0] sm:$0xff]  ;;  %v1493_v2 = vpack.c.bf16 %v408_v63, %v406_v62  ;;  %v412_v12 = vld [vmem:[%s2415_s14 + $0x238] sm:$0xff]  ;;  %v414_v26 = vld [vmem:[%s2415_s14 + $0x248] sm:$0xff] }
  0xc5   : > { %1578 = vmatprep.subr.bf16.mxu0 %v1577_v6  ;;  %v663_v6 = vld [vmem:[%s2421_s9 + $0x140] sm:$0xff]  ;;  %v1491_v1 = vpack.c.bf16 %v403_v60, %v401_v59  ;;  %v416_v27 = vld [vmem:[%s2415_s14 + $0x258] sm:$0xff]  ;;  %v415_v36 = vld [vmem:[%s2415_s14 + $0x250] sm:$0xff] }
  0xc6   : > { %v413_v35 = vld [vmem:[%s2415_s14 + $0x240] sm:$0xff]  ;;  %v418_v38 = vld [vmem:[%s2415_s14 + $0x268] sm:$0xff]  ;;  %v420_v39 = vld [vmem:[%s2415_s14 + $0x278] sm:$0xff] }
  0xc7   : > { %v417_v47 = vld [vmem:[%s2415_s14 + $0x260] sm:$0xff]  ;;  %v419_v48 = vld [vmem:[%s2415_s14 + $0x270] sm:$0xff]  ;;  %v422_v50 = vld [vmem:[%s2415_s14 + $0x288] sm:$0xff] }
  0xc8   : > { %v424_v51 = vld [vmem:[%s2415_s14 + $0x298] sm:$0xff]  ;;  %v421_v59 = vld [vmem:[%s2415_s14 + $0x280] sm:$0xff]  ;;  %v423_v60 = vld [vmem:[%s2415_s14 + $0x290] sm:$0xff] }
  0xc9   : > { %1452 = vmatpush1.bf16.xpose.msra.mxu1 %v1451_v8  ;;  %v665_v8 = vld [vmem:[%s2421_s9 + $0x150] sm:$0xff]  ;;  %v426_v62 = vld [vmem:[%s2415_s14 + $0x2a8] sm:$0xff]  ;;  %v428_v63 = vld [vmem:[%s2415_s14 + $0x2b8] sm:$0xff] }
  0xca   : > { %1454 = vmatprep.subr.bf16.mxu1 %v1453_v9  ;;  %v668_v9 = vld [vmem:[%s2421_s9 + $0x168] sm:$0xff]  ;;  %v1599_v13 = vpack.c.bf16 %v665_v8, %v663_v6  ;;  %v405_v8 = vld [vmem:[%s2415_s14 + $0x200] sm:$0xff] }
  0xcb   : > { %v970_v6 = vld [vmem:[%s2423_s8 + $0x28] sm:$0xff] }
  0xcc   : > { %1580 = vmatpush1.bf16.xpose.msra.mxu0 %v1579_v16  ;;  %v1601_v16 = vpack.c.bf16 %v670_v10, %v668_v9  ;;  %v407_v9 = vld [vmem:[%s2415_s14 + $0x210] sm:$0xff] }
  0xcd   : > { %1582 = vmatprep.subr.bf16.mxu0 %v1581_v19  ;;  %v667_v19 = vld [vmem:[%s2421_s9 + $0x160] sm:$0xff]  ;;  %v1495_v15 = vpack.c.bf16 %v407_v9, %v405_v8  ;;  %v427_v9 = vld [vmem:[%s2415_s14 + $0x2b0] sm:$0xff] }
  0xce   : > { %v425_v8 = vld [vmem:[%s2415_s14 + $0x2a0] sm:$0xff] }
  0xd1   : > { %1456 = vmatpush1.bf16.xpose.msra.mxu1 %v1455_v20  ;;  %v669_v20 = vld [vmem:[%s2421_s9 + $0x170] sm:$0xff] }
  0xd2   : > { %1458 = vmatprep.subr.bf16.mxu1 %v1457_v21  ;;  %v672_v21 = vld [vmem:[%s2421_s9 + $0x188] sm:$0xff]  ;;  %v1603_v25 = vpack.c.bf16 %v669_v20, %v667_v19  ;;  %v969_v19 = vld [vmem:[%s2423_s8 + $0x20] sm:$0xff] }
  0xd3   : > { %v974_v20 = vld [vmem:[%s2423_s8 + $0x48] sm:$0xff] }
  0xd4   : > { %1584 = vmatpush1.bf16.xpose.msra.mxu0 %v1583_v28  ;;  %v1605_v28 = vpack.c.bf16 %v674_v22, %v672_v21  ;;  %v978_v21 = vld [vmem:[%s2423_s8 + $0x68] sm:$0xff]  ;;  %v2580_v22 = vld [vmem:[#allocation3 + $0x10] sm:$0xff] }
  0xd5   : > { %1586 = vmatprep.subr.bf16.mxu0 %v1585_v31  ;;  %v671_v31 = vld [vmem:[%s2421_s9 + $0x180] sm:$0xff] }
  0xd9   : > { %1460 = vmatpush1.bf16.xpose.msra.mxu1 %v1459_v32  ;;  %v673_v32 = vld [vmem:[%s2421_s9 + $0x190] sm:$0xff] }
  0xda   : > { %1462 = vmatprep.subr.bf16.mxu1 %v1461_v33  ;;  %v676_v33 = vld [vmem:[%s2421_s9 + $0x1a8] sm:$0xff]  ;;  %v1607_v37 = vpack.c.bf16 %v673_v32, %v671_v31  ;;  %v973_v31 = vld [vmem:[%s2423_s8 + $0x40] sm:$0xff] }
  0xdb   : > { %v977_v32 = vld [vmem:[%s2423_s8 + $0x60] sm:$0xff] }
  0xdc   : > { %1588 = vmatpush1.bf16.xpose.msra.mxu0 %v1587_v40  ;;  %v1609_v40 = vpack.c.bf16 %v678_v34, %v676_v33  ;;  %v982_v33 = vld [vmem:[%s2423_s8 + $0x88] sm:$0xff] }
  0xdd   : > { %1590 = vmatprep.subr.bf16.mxu0 %v1589_v43  ;;  %v675_v43 = vld [vmem:[%s2421_s9 + $0x1a0] sm:$0xff]  ;;  %v986_v34 = vld [vmem:[%s2423_s8 + $0xa8] sm:$0xff] }
  0xe1   : > { %1464 = vmatpush1.bf16.xpose.msra.mxu1 %v1463_v44  ;;  %v677_v44 = vld [vmem:[%s2421_s9 + $0x1b0] sm:$0xff] }
  0xe2   : > { %1466 = vmatprep.subr.bf16.mxu1 %v1465_v45  ;;  %v680_v45 = vld [vmem:[%s2421_s9 + $0x1c8] sm:$0xff]  ;;  %v1611_v49 = vpack.c.bf16 %v677_v44, %v675_v43  ;;  %v981_v43 = vld [vmem:[%s2423_s8 + $0x80] sm:$0xff] }
  0xe3   : > { %v985_v44 = vld [vmem:[%s2423_s8 + $0xa0] sm:$0xff] }
  0xe4   : > { %1592 = vmatpush1.bf16.xpose.msra.mxu0 %v1591_v52  ;;  %v1613_v52 = vpack.c.bf16 %v682_v46, %v680_v45  ;;  %v990_v45 = vld [vmem:[%s2423_s8 + $0xc8] sm:$0xff] }
  0xe5   : > { %1594 = vmatprep.subr.bf16.mxu0 %v1593_v55  ;;  %v679_v55 = vld [vmem:[%s2421_s9 + $0x1c0] sm:$0xff]  ;;  %v994_v46 = vld [vmem:[%s2423_s8 + $0xe8] sm:$0xff] }
  0xe9   : > { %1468 = vmatpush1.bf16.xpose.msra.mxu1 %v1467_v56  ;;  %v681_v56 = vld [vmem:[%s2421_s9 + $0x1d0] sm:$0xff] }
  0xea   : > { %1470 = vmatprep.subr.bf16.mxu1 %v1469_v57  ;;  %v684_v57 = vld [vmem:[%s2421_s9 + $0x1e8] sm:$0xff]  ;;  %v1615_v61 = vpack.c.bf16 %v681_v56, %v679_v55  ;;  %v989_v55 = vld [vmem:[%s2423_s8 + $0xc0] sm:$0xff] }
  0xeb   : > { %v993_v56 = vld [vmem:[%s2423_s8 + $0xe0] sm:$0xff] }
  0xec   : > { %1596 = vmatpush1.bf16.xpose.msra.mxu0 %v1595_v0  ;;  %v1617_v0 = vpack.c.bf16 %v686_v58, %v684_v57  ;;  %v998_v57 = vld [vmem:[%s2423_s8 + $0x108] sm:$0xff] }
  0xed   : > { %1598 = vmatprep.subr.bf16.mxu0 %v1597_v3  ;;  %v683_v3 = vld [vmem:[%s2421_s9 + $0x1e0] sm:$0xff]  ;;  %v1002_v58 = vld [vmem:[%s2423_s8 + $0x128] sm:$0xff] }
  0xf1   : > { %1472 = vmatpush1.bf16.xpose.msra.mxu1 %v1471_v4  ;;  %v685_v4 = vld [vmem:[%s2421_s9 + $0x1f0] sm:$0xff] }
  0xf2   : > { %1474 = vmatprep.subr.bf16.mxu1 %v1473_v5  ;;  %v966_v5 = vld [vmem:[%s2423_s8 + $0x8] sm:$0xff]  ;;  %v1619_v10 = vpack.c.bf16 %v685_v4, %v683_v3  ;;  %v997_v3 = vld [vmem:[%s2423_s8 + $0x100] sm:$0xff] }
  0xf3   : > { %v1001_v4 = vld [vmem:[%s2423_s8 + $0x120] sm:$0xff] }
  0xf4   : > { %1600 = vmatpush1.bf16.xpose.msra.mxu0 %v1599_v13  ;;  %v1685_v13 = vpack.c.bf16 %v970_v6, %v966_v5  ;;  %v1006_v5 = vld [vmem:[%s2423_s8 + $0x148] sm:$0xff] }
  0xf5   : > { %1602 = vmatprep.subr.bf16.mxu0 %v1601_v16  ;;  %v1497_v16 = vpack.c.bf16 %v412_v12, %v410_v11  ;;  %v1010_v6 = vld [vmem:[%s2423_s8 + $0x168] sm:$0xff]  ;;  %v432_v12 = vld [vmem:[%s2415_s14 + $0x2d8] sm:$0xff] }
  0xf6   : > { %v430_v11 = vld [vmem:[%s2415_s14 + $0x2c8] sm:$0xff] }
  0xf9   : > { %1476 = vmatpush1.bf16.xpose.msra.mxu1 %v1475_v17  ;;  %v2572_v17 = vld [vmem:[#allocation3 + $0x18] sm:$0xff] }
  0xfa   : > { %1478 = vmatprep.subr.bf16.mxu1 %v1477_v18  ;;  %v965_v18 = vld [vmem:[%s2423_s8] sm:$0xff] }
  0xfc   : > { %1604 = vmatpush1.bf16.xpose.msra.mxu0 %v1603_v25  ;;  %v1687_v25 = vpack.c.bf16 %v969_v19, %v965_v18  ;;  %v1005_v18 = vld [vmem:[%s2423_s8 + $0x140] sm:$0xff] }
  0xfd   : > { %1606 = vmatprep.subr.bf16.mxu0 %v1605_v28  ;;  %v1689_v28 = vpack.c.bf16 %v978_v21, %v974_v20  ;;  %v1009_v19 = vld [vmem:[%s2423_s8 + $0x160] sm:$0xff]  ;;  %v1014_v20 = vld [vmem:[%s2423_s8 + $0x188] sm:$0xff] }
  0xfe   : > { %v1018_v21 = vld [vmem:[%s2423_s8 + $0x1a8] sm:$0xff] }
 0x101   : > { %1480 = vmatpush1.bf16.xpose.msra.mxu1 %v1479_v29  ;;  %v1499_v29 = vpack.c.bf16 %v411_v24, %v409_v23  ;;  %v429_v23 = vld [vmem:[%s2415_s14 + $0x2c0] sm:$0xff]  ;;  %v431_v24 = vld [vmem:[%s2415_s14 + $0x2d0] sm:$0xff] }
 0x102   : > { %1482 = vmatprep.subr.bf16.mxu1 %v1481_v30  ;;  %v1501_v30 = vpack.c.bf16 %v416_v27, %v414_v26  ;;  %v434_v26 = vld [vmem:[%s2415_s14 + $0x2e8] sm:$0xff]  ;;  %v436_v27 = vld [vmem:[%s2415_s14 + $0x2f8] sm:$0xff] }
 0x104   : > { %1608 = vmatpush1.bf16.xpose.msra.mxu0 %v1607_v37  ;;  %v1691_v37 = vpack.c.bf16 %v977_v32, %v973_v31  ;;  %v1013_v31 = vld [vmem:[%s2423_s8 + $0x180] sm:$0xff] }
 0x105   : > { %1610 = vmatprep.subr.bf16.mxu0 %v1609_v40  ;;  %v1693_v40 = vpack.c.bf16 %v986_v34, %v982_v33  ;;  %v1017_v32 = vld [vmem:[%s2423_s8 + $0x1a0] sm:$0xff]  ;;  %v1022_v33 = vld [vmem:[%s2423_s8 + $0x1c8] sm:$0xff] }
 0x106   : > { %v1026_v34 = vld [vmem:[%s2423_s8 + $0x1e8] sm:$0xff] }
 0x109   : > { %1484 = vmatpush1.bf16.xpose.msra.mxu1 %v1483_v41  ;;  %v1503_v41 = vpack.c.bf16 %v415_v36, %v413_v35  ;;  %v433_v35 = vld [vmem:[%s2415_s14 + $0x2e0] sm:$0xff]  ;;  %v435_v36 = vld [vmem:[%s2415_s14 + $0x2f0] sm:$0xff] }
 0x10a   : > { %1486 = vmatprep.subr.bf16.mxu1 %v1485_v42  ;;  %v1505_v42 = vpack.c.bf16 %v420_v39, %v418_v38  ;;  %v438_v38 = vld [vmem:[%s2415_s14 + $0x308] sm:$0xff]  ;;  %v440_v39 = vld [vmem:[%s2415_s14 + $0x318] sm:$0xff] }
 0x10c   : > { %1612 = vmatpush1.bf16.xpose.msra.mxu0 %v1611_v49  ;;  %v1695_v49 = vpack.c.bf16 %v985_v44, %v981_v43  ;;  %v1021_v43 = vld [vmem:[%s2423_s8 + $0x1c0] sm:$0xff] }
 0x10d   : > { %1614 = vmatprep.subr.bf16.mxu0 %v1613_v52  ;;  %v1697_v52 = vpack.c.bf16 %v994_v46, %v990_v45  ;;  %v1025_v44 = vld [vmem:[%s2423_s8 + $0x1e0] sm:$0xff]  ;;  %v1030_v45 = vld [vmem:[%s2423_s8 + $0x208] sm:$0xff] }
 0x10e   : > { %v1034_v46 = vld [vmem:[%s2423_s8 + $0x228] sm:$0xff] }
 0x111   : > { %1488 = vmatpush1.bf16.xpose.msra.mxu1 %v1487_v53  ;;  %v1507_v53 = vpack.c.bf16 %v419_v48, %v417_v47  ;;  %v437_v47 = vld [vmem:[%s2415_s14 + $0x300] sm:$0xff]  ;;  %v439_v48 = vld [vmem:[%s2415_s14 + $0x310] sm:$0xff] }
 0x112   : > { %1490 = vmatprep.subr.bf16.mxu1 %v1489_v54  ;;  %v1509_v54 = vpack.c.bf16 %v424_v51, %v422_v50  ;;  %v442_v50 = vld [vmem:[%s2415_s14 + $0x328] sm:$0xff]  ;;  %v444_v51 = vld [vmem:[%s2415_s14 + $0x338] sm:$0xff] }
 0x114   : > { %1616 = vmatpush1.bf16.xpose.msra.mxu0 %v1615_v61  ;;  %v1699_v61 = vpack.c.bf16 %v993_v56, %v989_v55  ;;  %v1029_v55 = vld [vmem:[%s2423_s8 + $0x200] sm:$0xff] }
 0x115   : > { %1618 = vmatprep.subr.bf16.mxu0 %v1617_v0  ;;  %v1701_v0 = vpack.c.bf16 %v1002_v58, %v998_v57  ;;  %v1033_v56 = vld [vmem:[%s2423_s8 + $0x220] sm:$0xff]  ;;  %v1038_v57 = vld [vmem:[%s2423_s8 + $0x248] sm:$0xff] }
 0x116   : > { %v1042_v58 = vld [vmem:[%s2423_s8 + $0x268] sm:$0xff] }
 0x119   : > { %1492 = vmatpush1.bf16.xpose.msra.mxu1 %v1491_v1  ;;  %v1511_v1 = vpack.c.bf16 %v423_v60, %v421_v59  ;;  %v441_v59 = vld [vmem:[%s2415_s14 + $0x320] sm:$0xff]  ;;  %v443_v60 = vld [vmem:[%s2415_s14 + $0x330] sm:$0xff] }
 0x11a   : > { %1494 = vmatprep.subr.bf16.mxu1 %v1493_v2  ;;  %v1513_v2 = vpack.c.bf16 %v428_v63, %v426_v62  ;;  %v446_v62 = vld [vmem:[%s2415_s14 + $0x348] sm:$0xff]  ;;  %v448_v63 = vld [vmem:[%s2415_s14 + $0x358] sm:$0xff] }
 0x11c   : > { %1620 = vmatpush1.bf16.xpose.msra.mxu0 %v1619_v10  ;;  %v1703_v10 = vpack.c.bf16 %v1001_v4, %v997_v3  ;;  %v1037_v3 = vld [vmem:[%s2423_s8 + $0x240] sm:$0xff] }
 0x11d   : > { %1686 = vmatprep.subr.bf16.mxu0 %v1685_v13  ;;  %v1705_v13 = vpack.c.bf16 %v1010_v6, %v1006_v5  ;;  %v1041_v4 = vld [vmem:[%s2423_s8 + $0x260] sm:$0xff]  ;;  %v1046_v5 = vld [vmem:[%s2423_s8 + $0x288] sm:$0xff] }
 0x11e   : > { %v1050_v6 = vld [vmem:[%s2423_s8 + $0x2a8] sm:$0xff] }
 0x120   : > { %534 = vmatmul.mubr.f32.vlgmr.msra.gmra.mrb[0].mxu1 %v2570_v14 }
 0x121   : > { %1496 = vmatpush1.bf16.xpose.msra.mxu1 %v1495_v15  ;;  %539 = vmatprep.mubr.f32.mxu1 %v2572_v17  ;;  %v1515_v15 = vpack.c.bf16 %v427_v9, %v425_v8  ;;  %v445_v8 = vld [vmem:[%s2415_s14 + $0x340] sm:$0xff]  ;;  %v447_v9 = vld [vmem:[%s2415_s14 + $0x350] sm:$0xff] }
 0x122   : > { %1498 = vmatprep.subr.bf16.mxu1 %v1497_v16  ;;  %v1517_v16 = vpack.c.bf16 %v432_v12, %v430_v11  ;;  %v450_v11 = vld [vmem:[%s2415_s14 + $0x368] sm:$0xff]  ;;  %v452_v12 = vld [vmem:[%s2415_s14 + $0x378] sm:$0xff] }
 0x123   : > { %816 = vmatmul.mubr.f32.vlgmr.msra.gmra.mrb[0].mxu0 %v2570_v14 }
 0x124   : > { %540 = vmatmul.mubr.f32.gmra.mrb[2].mxu1 %v2580_v22  ;;  %1688 = vmatpush1.bf16.xpose.msra.mxu0 %v1687_v25  ;;  %v1707_v25 = vpack.c.bf16 %v1009_v19, %v1005_v18  ;;  %v1045_v18 = vld [vmem:[%s2423_s8 + $0x280] sm:$0xff] }
 0x125   : > { %610 = vmatprep.mubr.f32.mxu1 %v2478_v7  ;;  %821 = vmatprep.mubr.f32.mxu0 %v2572_v17  ;;  %v1049_v19 = vld [vmem:[%s2423_s8 + $0x2a0] sm:$0xff] }
 0x126   : > { %1690 = vmatprep.subr.bf16.mxu0 %v1689_v28  ;;  %v1709_v28 = vpack.c.bf16 %v1018_v21, %v1014_v20  ;;  %v1054_v20 = vld [vmem:[%s2423_s8 + $0x2c8] sm:$0xff] }
 0x127   : > { %822 = vmatmul.mubr.f32.gmra.mrb[2].mxu0 %v2580_v22  ;;  %v1058_v21 = vld [vmem:[%s2423_s8 + $0x2e8] sm:$0xff] }
 0x129   : > { %1500 = vmatpush1.bf16.xpose.msra.mxu1 %v1499_v29  ;;  %v1519_v29 = vpack.c.bf16 %v431_v24, %v429_v23  ;;  %v449_v23 = vld [vmem:[%s2415_s14 + $0x360] sm:$0xff]  ;;  %v451_v24 = vld [vmem:[%s2415_s14 + $0x370] sm:$0xff] }
 0x12a   : > { %1502 = vmatprep.subr.bf16.mxu1 %v1501_v30  ;;  %v1521_v30 = vpack.c.bf16 %v436_v27, %v434_v26  ;;  %v454_v26 = vld [vmem:[%s2415_s14 + $0x388] sm:$0xff]  ;;  %v456_v27 = vld [vmem:[%s2415_s14 + $0x398] sm:$0xff] }
 0x12c   : > { %1692 = vmatpush1.bf16.xpose.msra.mxu0 %v1691_v37  ;;  %v1711_v37 = vpack.c.bf16 %v1017_v32, %v1013_v31  ;;  %v1053_v31 = vld [vmem:[%s2423_s8 + $0x2c0] sm:$0xff] }
 0x12d   : > { %1694 = vmatprep.subr.bf16.mxu0 %v1693_v40  ;;  %v1713_v40 = vpack.c.bf16 %v1026_v34, %v1022_v33  ;;  %v1057_v32 = vld [vmem:[%s2423_s8 + $0x2e0] sm:$0xff]  ;;  %v1062_v33 = vld [vmem:[%s2423_s8 + $0x308] sm:$0xff] }
 0x12e   : > { %v1066_v34 = vld [vmem:[%s2423_s8 + $0x328] sm:$0xff] }
 0x131   : > { %1504 = vmatpush1.bf16.xpose.msra.mxu1 %v1503_v41  ;;  %v1523_v41 = vpack.c.bf16 %v435_v36, %v433_v35  ;;  %v453_v35 = vld [vmem:[%s2415_s14 + $0x380] sm:$0xff]  ;;  %v455_v36 = vld [vmem:[%s2415_s14 + $0x390] sm:$0xff] }
 0x132   : > { %1506 = vmatprep.subr.bf16.mxu1 %v1505_v42  ;;  %v1525_v42 = vpack.c.bf16 %v440_v39, %v438_v38  ;;  %v458_v38 = vld [vmem:[%s2415_s14 + $0x3a8] sm:$0xff]  ;;  %v460_v39 = vld [vmem:[%s2415_s14 + $0x3b8] sm:$0xff] }
 0x134   : > { %1696 = vmatpush1.bf16.xpose.msra.mxu0 %v1695_v49  ;;  %v1715_v49 = vpack.c.bf16 %v1025_v44, %v1021_v43  ;;  %v1061_v43 = vld [vmem:[%s2423_s8 + $0x300] sm:$0xff] }
 0x135   : > { %1698 = vmatprep.subr.bf16.mxu0 %v1697_v52  ;;  %v1717_v52 = vpack.c.bf16 %v1034_v46, %v1030_v45  ;;  %v1065_v44 = vld [vmem:[%s2423_s8 + $0x320] sm:$0xff]  ;;  %v1070_v45 = vld [vmem:[%s2423_s8 + $0x348] sm:$0xff] }
 0x136   : > { %v1074_v46 = vld [vmem:[%s2423_s8 + $0x368] sm:$0xff] }
 0x139   : > { %1508 = vmatpush1.bf16.xpose.msra.mxu1 %v1507_v53  ;;  %v1527_v53 = vpack.c.bf16 %v439_v48, %v437_v47  ;;  %v457_v47 = vld [vmem:[%s2415_s14 + $0x3a0] sm:$0xff]  ;;  %v459_v48 = vld [vmem:[%s2415_s14 + $0x3b0] sm:$0xff] }
 0x13a   : > { %1510 = vmatprep.subr.bf16.mxu1 %v1509_v54  ;;  %v1529_v54 = vpack.c.bf16 %v444_v51, %v442_v50  ;;  %v462_v50 = vld [vmem:[%s2415_s14 + $0x3c8] sm:$0xff]  ;;  %v464_v51 = vld [vmem:[%s2415_s14 + $0x3d8] sm:$0xff] }
 0x13c   : > { %1700 = vmatpush1.bf16.xpose.msra.mxu0 %v1699_v61  ;;  %v1719_v61 = vpack.c.bf16 %v1033_v56, %v1029_v55  ;;  %v1069_v55 = vld [vmem:[%s2423_s8 + $0x340] sm:$0xff] }
 0x13d   : > { %1702 = vmatprep.subr.bf16.mxu0 %v1701_v0  ;;  %v1721_v0 = vpack.c.bf16 %v1042_v58, %v1038_v57  ;;  %v1073_v56 = vld [vmem:[%s2423_s8 + $0x360] sm:$0xff]  ;;  %v1078_v57 = vld [vmem:[%s2423_s8 + $0x388] sm:$0xff] }
 0x13e   : > { %v1082_v58 = vld [vmem:[%s2423_s8 + $0x3a8] sm:$0xff] }
 0x141   : > { %1512 = vmatpush1.bf16.xpose.msra.mxu1 %v1511_v1  ;;  %v1531_v1 = vpack.c.bf16 %v443_v60, %v441_v59  ;;  %v461_v59 = vld [vmem:[%s2415_s14 + $0x3c0] sm:$0xff]  ;;  %v463_v60 = vld [vmem:[%s2415_s14 + $0x3d0] sm:$0xff] }
 0x142   : > { %1514 = vmatprep.subr.bf16.mxu1 %v1513_v2  ;;  %v1533_v2 = vpack.c.bf16 %v448_v63, %v446_v62  ;;  %v466_v62 = vld [vmem:[%s2415_s14 + $0x3e8] sm:$0xff]  ;;  %v468_v63 = vld [vmem:[%s2415_s14 + $0x3f8] sm:$0xff] }
 0x144   : > { %1704 = vmatpush1.bf16.xpose.msra.mxu0 %v1703_v10  ;;  %v1723_v10 = vpack.c.bf16 %v1041_v4, %v1037_v3  ;;  %v1077_v3 = vld [vmem:[%s2423_s8 + $0x380] sm:$0xff] }
 0x145   : > { %1706 = vmatprep.subr.bf16.mxu0 %v1705_v13  ;;  %v1725_v13 = vpack.c.bf16 %v1050_v6, %v1046_v5  ;;  %v1081_v4 = vld [vmem:[%s2423_s8 + $0x3a0] sm:$0xff]  ;;  %v1086_v5 = vld [vmem:[%s2423_s8 + $0x3c8] sm:$0xff] }
 0x146   : > { %v1090_v6 = vld [vmem:[%s2423_s8 + $0x3e8] sm:$0xff] }
 0x149   : > { %1516 = vmatpush1.bf16.xpose.msra.mxu1 %v1515_v15  ;;  %v1535_v15 = vpack.c.bf16 %v447_v9, %v445_v8  ;;  %v465_v8 = vld [vmem:[%s2415_s14 + $0x3e0] sm:$0xff]  ;;  %v467_v9 = vld [vmem:[%s2415_s14 + $0x3f0] sm:$0xff] }
 0x14a   : > { %1518 = vmatprep.subr.bf16.mxu1 %v1517_v16  ;;  %v1537_v16 = vpack.c.bf16 %v452_v12, %v450_v11  ;;  %v688_v11 = vld [vmem:[%s2421_s9 + $0x208] sm:$0xff]  ;;  %v690_v12 = vld [vmem:[%s2421_s9 + $0x218] sm:$0xff] }
 0x14c   : > { %1708 = vmatpush1.bf16.xpose.msra.mxu0 %v1707_v25  ;;  %v1727_v25 = vpack.c.bf16 %v1049_v19, %v1045_v18  ;;  %v1085_v18 = vld [vmem:[%s2423_s8 + $0x3c0] sm:$0xff] }
 0x14d   : > { %1710 = vmatprep.subr.bf16.mxu0 %v1709_v28  ;;  %v1729_v28 = vpack.c.bf16 %v1058_v21, %v1054_v20  ;;  %v1089_v19 = vld [vmem:[%s2423_s8 + $0x3e0] sm:$0xff]  ;;  %v689_v21 = vld [vmem:[%s2421_s9 + $0x210] sm:$0xff] }
 0x14e   : > { %v687_v20 = vld [vmem:[%s2421_s9 + $0x200] sm:$0xff] }
 0x151   : > { %1520 = vmatpush1.bf16.xpose.msra.mxu1 %v1519_v29  ;;  %v1539_v29 = vpack.c.bf16 %v451_v24, %v449_v23  ;;  %v1747_v23 = vpack.c.bf16 %v1089_v19, %v1085_v18  ;;  %v692_v24 = vld [vmem:[%s2421_s9 + $0x228] sm:$0xff] }
 0x152   : > { %1522 = vmatprep.subr.bf16.mxu1 %v1521_v30  ;;  %v1541_v30 = vpack.c.bf16 %v456_v27, %v454_v26  ;;  %v1623_v26 = vpack.c.bf16 %v689_v21, %v687_v20  ;;  %v727_v20 = vld [vmem:[%s2421_s9 + $0x340] sm:$0xff]  ;;  %v729_v21 = vld [vmem:[%s2421_s9 + $0x350] sm:$0xff] }
 0x154   : > { %1712 = vmatpush1.bf16.xpose.msra.mxu0 %v1711_v37  ;;  %v1731_v37 = vpack.c.bf16 %v1057_v32, %v1053_v31  ;;  %v698_v31 = vld [vmem:[%s2421_s9 + $0x258] sm:$0xff] }
 0x155   : > { %1714 = vmatprep.subr.bf16.mxu0 %v1713_v40  ;;  %v1733_v40 = vpack.c.bf16 %v1066_v34, %v1062_v33  ;;  %v695_v34 = vld [vmem:[%s2421_s9 + $0x240] sm:$0xff] }
 0x159   : > { %1524 = vmatpush1.bf16.xpose.msra.mxu1 %v1523_v41  ;;  %v1543_v41 = vpack.c.bf16 %v455_v36, %v453_v35  ;;  %v697_v35 = vld [vmem:[%s2421_s9 + $0x250] sm:$0xff]  ;;  %v700_v36 = vld [vmem:[%s2421_s9 + $0x268] sm:$0xff] }
 0x15a   : > { %1526 = vmatprep.subr.bf16.mxu1 %v1525_v42  ;;  %v1545_v42 = vpack.c.bf16 %v460_v39, %v458_v38  ;;  %v1631_v38 = vpack.c.bf16 %v697_v35, %v695_v34 }
 0x15c   : > { %1716 = vmatpush1.bf16.xpose.msra.mxu0 %v1715_v49  ;;  %v1735_v49 = vpack.c.bf16 %v1065_v44, %v1061_v43 }
 0x15d   : > { %1718 = vmatprep.subr.bf16.mxu0 %v1717_v52  ;;  %v1737_v52 = vpack.c.bf16 %v1074_v46, %v1070_v45  ;;  %v703_v45 = vld [vmem:[%s2421_s9 + $0x280] sm:$0xff]  ;;  %v705_v46 = vld [vmem:[%s2421_s9 + $0x290] sm:$0xff] }
 0x161   : > { %1528 = vmatpush1.bf16.xpose.msra.mxu1 %v1527_v53  ;;  %v1547_v53 = vpack.c.bf16 %v459_v48, %v457_v47  ;;  %v708_v47 = vld [vmem:[%s2421_s9 + $0x2a8] sm:$0xff]  ;;  %v710_v48 = vld [vmem:[%s2421_s9 + $0x2b8] sm:$0xff] }
 0x162   : > { %1530 = vmatprep.subr.bf16.mxu1 %v1529_v54  ;;  %v1549_v54 = vpack.c.bf16 %v464_v51, %v462_v50  ;;  %v1641_v50 = vpack.c.bf16 %v710_v48, %v708_v47  ;;  %v707_v51 = vld [vmem:[%s2421_s9 + $0x2a0] sm:$0xff]  ;;  %v737_v48 = vld [vmem:[%s2421_s9 + $0x390] sm:$0xff] }
 0x163   : > { %v735_v47 = vld [vmem:[%s2421_s9 + $0x380] sm:$0xff] }
 0x164   : > { %1720 = vmatpush1.bf16.xpose.msra.mxu0 %v1719_v61  ;;  %v1739_v61 = vpack.c.bf16 %v1073_v56, %v1069_v55 }
 0x165   : > { %1722 = vmatprep.subr.bf16.mxu0 %v1721_v0  ;;  %v1741_v0 = vpack.c.bf16 %v1082_v58, %v1078_v57  ;;  %v711_v57 = vld [vmem:[%s2421_s9 + $0x2c0] sm:$0xff]  ;;  %v713_v58 = vld [vmem:[%s2421_s9 + $0x2d0] sm:$0xff] }
 0x169   : > { %1532 = vmatpush1.bf16.xpose.msra.mxu1 %v1531_v1  ;;  %v1551_v1 = vpack.c.bf16 %v463_v60, %v461_v59  ;;  %v716_v59 = vld [vmem:[%s2421_s9 + $0x2e8] sm:$0xff]  ;;  %v718_v60 = vld [vmem:[%s2421_s9 + $0x2f8] sm:$0xff] }
 0x16a   : > { %1534 = vmatprep.subr.bf16.mxu1 %v1533_v2  ;;  %v1553_v2 = vpack.c.bf16 %v468_v63, %v466_v62  ;;  %v1649_v62 = vpack.c.bf16 %v718_v60, %v716_v59  ;;  %v715_v63 = vld [vmem:[%s2421_s9 + $0x2e0] sm:$0xff]  ;;  %v741_v59 = vld [vmem:[%s2421_s9 + $0x3b0] sm:$0xff] }
 0x16c   : > { %1724 = vmatpush1.bf16.xpose.msra.mxu0 %v1723_v10  ;;  %v1743_v10 = vpack.c.bf16 %v1081_v4, %v1077_v3 }
 0x16d   : > { %1726 = vmatprep.subr.bf16.mxu0 %v1725_v13  ;;  %v1745_v13 = vpack.c.bf16 %v1090_v6, %v1086_v5  ;;  %v719_v5 = vld [vmem:[%s2421_s9 + $0x300] sm:$0xff]  ;;  %v721_v6 = vld [vmem:[%s2421_s9 + $0x310] sm:$0xff] }
 0x171   : > { %1536 = vmatpush1.bf16.xpose.msra.mxu1 %v1535_v15  ;;  %v1555_v15 = vpack.c.bf16 %v467_v9, %v465_v8  ;;  %v724_v8 = vld [vmem:[%s2421_s9 + $0x328] sm:$0xff]  ;;  %v726_v9 = vld [vmem:[%s2421_s9 + $0x338] sm:$0xff] }
 0x172   : > { %1538 = vmatprep.subr.bf16.mxu1 %v1537_v16  ;;  %v1621_v16 = vpack.c.bf16 %v690_v12, %v688_v11  ;;  %v1657_v11 = vpack.c.bf16 %v726_v9, %v724_v8  ;;  %v723_v12 = vld [vmem:[%s2421_s9 + $0x320] sm:$0xff]  ;;  %v745_v9 = vld [vmem:[%s2421_s9 + $0x3d0] sm:$0xff] }
 0x173   : > { %v743_v8 = vld [vmem:[%s2421_s9 + $0x3c0] sm:$0xff] }
 0x174   : > { %1728 = vmatpush1.bf16.xpose.msra.mxu0 %v1727_v25  ;;  %v694_v25 = vld [vmem:[%s2421_s9 + $0x238] sm:$0xff] }
 0x175   : > { %1730 = vmatprep.subr.bf16.mxu0 %v1729_v28  ;;  %v1625_v27 = vpack.c.bf16 %v694_v25, %v692_v24  ;;  %v691_v28 = vld [vmem:[%s2421_s9 + $0x220] sm:$0xff]  ;;  %v734_v24 = vld [vmem:[%s2421_s9 + $0x378] sm:$0xff]  ;;  %v1663_v25 = vpack.c.bf16 %v729_v21, %v727_v20  ;;  %v971_v20 = vld [vmem:[%s2423_s8 + $0x30] sm:$0xff] }
 0x179   : > { %1540 = vmatpush1.bf16.xpose.msra.mxu1 %v1539_v29  ;;  %v693_v29 = vld [vmem:[%s2421_s9 + $0x230] sm:$0xff] }
 0x17a   : > { %1542 = vmatprep.subr.bf16.mxu1 %v1541_v30  ;;  %v696_v30 = vld [vmem:[%s2421_s9 + $0x248] sm:$0xff]  ;;  %v1627_v32 = vpack.c.bf16 %v693_v29, %v691_v28  ;;  %v733_v28 = vld [vmem:[%s2421_s9 + $0x370] sm:$0xff] }
 0x17b   : > { %v1629_v33 = vpack.c.bf16 %v698_v31, %v696_v30  ;;  %v736_v30 = vld [vmem:[%s2421_s9 + $0x388] sm:$0xff]  ;;  %v738_v31 = vld [vmem:[%s2421_s9 + $0x398] sm:$0xff] }
 0x17c   : > { %1732 = vmatpush1.bf16.xpose.msra.mxu0 %v1731_v37  ;;  %v702_v37 = vld [vmem:[%s2421_s9 + $0x278] sm:$0xff] }
 0x17d   : > { %1734 = vmatprep.subr.bf16.mxu0 %v1733_v40  ;;  %v1633_v39 = vpack.c.bf16 %v702_v37, %v700_v36  ;;  %v699_v40 = vld [vmem:[%s2421_s9 + $0x260] sm:$0xff]  ;;  %v968_v36 = vld [vmem:[%s2423_s8 + $0x18] sm:$0xff] }
 0x17e   : > { %v972_v37 = vld [vmem:[%s2423_s8 + $0x38] sm:$0xff] }
 0x181   : > { %1544 = vmatpush1.bf16.xpose.msra.mxu1 %v1543_v41  ;;  %v701_v41 = vld [vmem:[%s2421_s9 + $0x270] sm:$0xff] }
 0x182   : > { %1546 = vmatprep.subr.bf16.mxu1 %v1545_v42  ;;  %v706_v42 = vld [vmem:[%s2421_s9 + $0x298] sm:$0xff]  ;;  %v1635_v43 = vpack.c.bf16 %v701_v41, %v699_v40  ;;  %v1749_v40 = vpack.c.bf16 %v972_v37, %v968_v36 }
 0x184   : > { %1736 = vmatpush1.bf16.xpose.msra.mxu0 %v1735_v49  ;;  %v1639_v49 = vpack.c.bf16 %v705_v46, %v703_v45 }
 0x185   : > { %1738 = vmatprep.subr.bf16.mxu0 %v1737_v52  ;;  %v709_v52 = vld [vmem:[%s2421_s9 + $0x2b0] sm:$0xff] }
 0x186   : > { %v1643_v55 = vpack.c.bf16 %v709_v52, %v707_v51  ;;  %v742_v51 = vld [vmem:[%s2421_s9 + $0x3b8] sm:$0xff] }
 0x189   : > { %1548 = vmatpush1.bf16.xpose.msra.mxu1 %v1547_v53  ;;  %v712_v53 = vld [vmem:[%s2421_s9 + $0x2c8] sm:$0xff] }
 0x18a   : > { %1550 = vmatprep.subr.bf16.mxu1 %v1549_v54  ;;  %v714_v54 = vld [vmem:[%s2421_s9 + $0x2d8] sm:$0xff] }
 0x18b   : > { %v1645_v56 = vpack.c.bf16 %v714_v54, %v712_v53  ;;  %v1671_v54 = vpack.c.bf16 %v737_v48, %v735_v47 }
 0x18c   : > { %1740 = vmatpush1.bf16.xpose.msra.mxu0 %v1739_v61  ;;  %v1647_v61 = vpack.c.bf16 %v713_v58, %v711_v57  ;;  %v739_v58 = vld [vmem:[%s2421_s9 + $0x3a0] sm:$0xff] }
 0x18d   : > { %1742 = vmatprep.subr.bf16.mxu0 %v1741_v0  ;;  %v717_v0 = vld [vmem:[%s2421_s9 + $0x2f0] sm:$0xff] }
 0x18e   : > { %v1651_v3 = vpack.c.bf16 %v717_v0, %v715_v63  ;;  %v746_v63 = vld [vmem:[%s2421_s9 + $0x3d8] sm:$0xff] }
 0x191   : > { %1552 = vmatpush1.bf16.xpose.msra.mxu1 %v1551_v1  ;;  %v720_v1 = vld [vmem:[%s2421_s9 + $0x308] sm:$0xff] }
 0x192   : > { %1554 = vmatprep.subr.bf16.mxu1 %v1553_v2  ;;  %v722_v2 = vld [vmem:[%s2421_s9 + $0x318] sm:$0xff] }
 0x193   : > { %v1653_v4 = vpack.c.bf16 %v722_v2, %v720_v1  ;;  %v1675_v1 = vpack.c.bf16 %v741_v59, %v739_v58  ;;  %v1007_v58 = vld [vmem:[%s2423_s8 + $0x150] sm:$0xff] }
 0x194   : > { %1744 = vmatpush1.bf16.xpose.msra.mxu0 %v1743_v10  ;;  %v1655_v10 = vpack.c.bf16 %v721_v6, %v719_v5  ;;  %v1011_v59 = vld [vmem:[%s2423_s8 + $0x170] sm:$0xff] }
 0x195   : > { %1746 = vmatprep.subr.bf16.mxu0 %v1745_v13  ;;  %v725_v13 = vld [vmem:[%s2421_s9 + $0x330] sm:$0xff] }
 0x196   : > { %v1659_v18 = vpack.c.bf16 %v725_v13, %v723_v12  ;;  %v1679_v12 = vpack.c.bf16 %v745_v9, %v743_v8  ;;  %v1027_v8 = vld [vmem:[%s2423_s8 + $0x1f0] sm:$0xff]  ;;  %v1032_v9 = vld [vmem:[%s2423_s8 + $0x218] sm:$0xff] }
 0x199   : > { %1556 = vmatpush1.bf16.xpose.msra.mxu1 %v1555_v15  ;;  %v728_v15 = vld [vmem:[%s2421_s9 + $0x348] sm:$0xff] }
 0x19a   : > { %1622 = vmatprep.subr.bf16.mxu1 %v1621_v16  ;;  %v730_v16 = vld [vmem:[%s2421_s9 + $0x358] sm:$0xff] }
 0x19b   : > { %v1661_v19 = vpack.c.bf16 %v730_v16, %v728_v15 }
 0x19c   : > { %1748 = vmatpush1.bf16.xpose.msra.mxu0 %v1747_v23  ;;  %v732_v23 = vld [vmem:[%s2421_s9 + $0x368] sm:$0xff] }
 0x19d   : > { %1750 = vmatprep.subr.bf16.mxu0 %v1749_v40  ;;  %v984_v40 = vld [vmem:[%s2423_s8 + $0x98] sm:$0xff] }
 0x1a0   : > { %611 = vmatmul.mubr.f32.vlgmr.msra.gmra.mrb[4].mxu1 %v2570_v14 }
 0x1a1   : > { %1624 = vmatpush1.bf16.xpose.msra.mxu1 %v1623_v26  ;;  %616 = vmatprep.mubr.f32.mxu1 %v2572_v17  ;;  %v1665_v26 = vpack.c.bf16 %v734_v24, %v732_v23  ;;  %v976_v23 = vld [vmem:[%s2423_s8 + $0x58] sm:$0xff] }
 0x1a2   : > { %1626 = vmatprep.subr.bf16.mxu1 %v1625_v27  ;;  %v731_v27 = vld [vmem:[%s2421_s9 + $0x360] sm:$0xff]  ;;  %v980_v24 = vld [vmem:[%s2423_s8 + $0x78] sm:$0xff] }
 0x1a3   : > { %v1667_v35 = vpack.c.bf16 %v733_v28, %v731_v27  ;;  %v749_v27 = vld [vmem:[%s2421_s9 + $0x3f0] sm:$0xff] }
 0x1a4   : > { %617 = vmatmul.mubr.f32.gmra.mrb[6].mxu1 %v2580_v22 }
 0x1a5   : > { %892 = vmatprep.mubr.f32.mxu1 %v2478_v7  ;;  %v704_v7 = vld [vmem:[%s2421_s9 + $0x288] sm:$0xff] }
 0x1a6   : > { %v1637_v44 = vpack.c.bf16 %v706_v42, %v704_v7 }
 0x1a9   : > { %1628 = vmatpush1.bf16.xpose.msra.mxu1 %v1627_v32 }
 0x1aa   : > { %1630 = vmatprep.subr.bf16.mxu1 %v1629_v33 }
 0x1b1   : > { %1632 = vmatpush1.bf16.xpose.msra.mxu1 %v1631_v38 }
 0x1b2   : > { %1634 = vmatprep.subr.bf16.mxu1 %v1633_v39  ;;  %v1669_v39 = vpack.c.bf16 %v738_v31, %v736_v30 }
 0x1b9   : > { %1636 = vmatpush1.bf16.xpose.msra.mxu1 %v1635_v43 }
 0x1ba   : > { %1638 = vmatprep.subr.bf16.mxu1 %v1637_v44 }
 0x1c1   : > { %1640 = vmatpush1.bf16.xpose.msra.mxu1 %v1639_v49 }
 0x1c2   : > { %1642 = vmatprep.subr.bf16.mxu1 %v1641_v50  ;;  %v740_v50 = vld [vmem:[%s2421_s9 + $0x3a8] sm:$0xff] }
 0x1c9   : > { %1644 = vmatpush1.bf16.xpose.msra.mxu1 %v1643_v55 }
 0x1ca   : > { %1646 = vmatprep.subr.bf16.mxu1 %v1645_v56  ;;  %v1673_v56 = vpack.c.bf16 %v742_v51, %v740_v50  ;;  %v1000_v50 = vld [vmem:[%s2423_s8 + $0x118] sm:$0xff] }
 0x1cb   : > { %v1004_v51 = vld [vmem:[%s2423_s8 + $0x138] sm:$0xff] }
 0x1d1   : > { %1648 = vmatpush1.bf16.xpose.msra.mxu1 %v1647_v61 }
 0x1d2   : > { %1650 = vmatprep.subr.bf16.mxu1 %v1649_v62  ;;  %v744_v62 = vld [vmem:[%s2421_s9 + $0x3c8] sm:$0xff] }
 0x1d9   : > { %1652 = vmatpush1.bf16.xpose.msra.mxu1 %v1651_v3  ;;  %v1677_v3 = vpack.c.bf16 %v746_v63, %v744_v62  ;;  %v1771_v62 = vpack.c.bf16 %v1011_v59, %v1007_v58  ;;  %v1087_v58 = vld [vmem:[%s2423_s8 + $0x3d0] sm:$0xff] }
 0x1da   : > { %1654 = vmatprep.subr.bf16.mxu1 %v1653_v4  ;;  %v1091_v59 = vld [vmem:[%s2423_s8 + $0x3f0] sm:$0xff] }
 0x1e1   : > { %1656 = vmatpush1.bf16.xpose.msra.mxu1 %v1655_v10  ;;  %v748_v10 = vld [vmem:[%s2421_s9 + $0x3e8] sm:$0xff] }
 0x1e2   : > { %1658 = vmatprep.subr.bf16.mxu1 %v1657_v11  ;;  %v750_v11 = vld [vmem:[%s2421_s9 + $0x3f8] sm:$0xff] }
 0x1e3   : > { %v1681_v13 = vpack.c.bf16 %v750_v11, %v748_v10  ;;  %v1036_v10 = vld [vmem:[%s2423_s8 + $0x238] sm:$0xff] }
 0x1e9   : > { %1660 = vmatpush1.bf16.xpose.msra.mxu1 %v1659_v18 }
 0x1ea   : > { %1662 = vmatprep.subr.bf16.mxu1 %v1661_v19  ;;  %v967_v19 = vld [vmem:[%s2423_s8 + $0x10] sm:$0xff] }
 0x1eb   : > { %v1751_v31 = vpack.c.bf16 %v971_v20, %v967_v19 }
 0x1f1   : > { %1664 = vmatpush1.bf16.xpose.msra.mxu1 %v1663_v25 }
 0x1f2   : > { %1666 = vmatprep.subr.bf16.mxu1 %v1665_v26  ;;  %v747_v26 = vld [vmem:[%s2421_s9 + $0x3e0] sm:$0xff] }
 0x1f3   : > { %v2755_v29 = vpop.f32.mrb[0].mxu1 }
 0x1f4   : > { %v905_v32 = vsub.f32 0.0, %v2755_v29  ;;  %v2760_v33 = vpop.f32.mrb[1].mxu1 }
 0x1f5   : > { %v906_v34 = vsub.f32 0.0, %v2760_v33 }
 0x1f6   : > { %v913_v38 = vmul.f32 1.442695, %v905_v32  ;;  %v817_v42 = vpop.f32.mrb[0].mxu0 }
 0x1f7   : > { %v915_v41 = vmul.f32 1.442695, %v906_v34  ;;  %v2765_v7 = vpop.f32.mrb[2].mxu1  ;;  %v819_v45 = vpop.f32.mrb[1].mxu0  ;;  %v1753_v34 = vpack.c.bf16 %v980_v24, %v976_v23  ;;  %v1043_v23 = vld [vmem:[%s2423_s8 + $0x270] sm:$0xff]  ;;  %v1048_v24 = vld [vmem:[%s2423_s8 + $0x298] sm:$0xff] }
 0x1f8   : > { %1908 = vpow2.f32 %v913_v38  ;;  %v909_v43 = vsub.f32 0.0, %v2765_v7  ;;  %v2768_v44 = vpop.f32.mrb[3].mxu1  ;;  %v975_v38 = vld [vmem:[%s2423_s8 + $0x50] sm:$0xff] }
 0x1f9   : > { %1910 = vpow2.f32 %v915_v41  ;;  %1668 = vmatpush1.bf16.xpose.msra.mxu1 %v1667_v35  ;;  %v910_v46 = vsub.f32 0.0, %v2768_v44  ;;  %v988_v41 = vld [vmem:[%s2423_s8 + $0xb8] sm:$0xff] }
 0x1fa   : > { %1670 = vmatprep.subr.bf16.mxu1 %v1669_v39  ;;  %v921_v49 = vmul.f32 1.442695, %v909_v43  ;;  %v823_v53 = vpop.f32.mrb[2].mxu0  ;;  %v979_v39 = vld [vmem:[%s2423_s8 + $0x70] sm:$0xff] }
 0x1fb   : > { %v923_v52 = vmul.f32 1.442695, %v910_v46  ;;  %v825_v55 = vpop.f32.mrb[3].mxu0  ;;  %v983_v43 = vld [vmem:[%s2423_s8 + $0x90] sm:$0xff]  ;;  %v996_v46 = vld [vmem:[%s2423_s8 + $0xf8] sm:$0xff] }
 0x1fc   : > { %1912 = vpow2.f32 %v921_v49  ;;  %v991_v49 = vld [vmem:[%s2423_s8 + $0xd0] sm:$0xff] }
 0x1fd   : > { %1914 = vpow2.f32 %v923_v52  ;;  %v1765_v52 = vpack.c.bf16 %v1004_v51, %v1000_v50  ;;  %v1080_v50 = vld [vmem:[%s2423_s8 + $0x398] sm:$0xff] }
 0x1fe   : > { %v1084_v51 = vld [vmem:[%s2423_s8 + $0x3b8] sm:$0xff] }
 0x201   : > { %1672 = vmatpush1.bf16.xpose.msra.mxu1 %v1671_v54  ;;  %v1003_v54 = vld [vmem:[%s2423_s8 + $0x130] sm:$0xff] }
 0x202   : > { %v1909_v57 = vpop.eup %1908  ;;  %1674 = vmatprep.subr.bf16.mxu1 %v1673_v56 }
 0x203   : > { %v1911_v60 = vpop.eup %1910  ;;  %v929_v61 = vadd.f32 1.0, %v1909_v57 }
 0x204   : > { %v930_v0 = vadd.f32 1.0, %v1911_v60  ;;  %v1016_v60 = vld [vmem:[%s2423_s8 + $0x198] sm:$0xff] }
 0x205   : > { %1916 = vrcp.f32 %v929_v61  ;;  %v1020_v61 = vld [vmem:[%s2423_s8 + $0x1b8] sm:$0xff] }
 0x206   : > { %v1913_v2 = vpop.eup %1912  ;;  %1918 = vrcp.f32 %v930_v0  ;;  %v1773_v63 = vpack.c.bf16 %v1020_v61, %v1016_v60  ;;  %v1015_v0 = vld [vmem:[%s2423_s8 + $0x190] sm:$0xff]  ;;  %v1811_v60 = vpack.c.bf16 %v1091_v59, %v1087_v58 }
 0x207   : > { %v1915_v4 = vpop.eup %1914  ;;  %v933_v5 = vadd.f32 1.0, %v1913_v2  ;;  %v1024_v2 = vld [vmem:[%s2423_s8 + $0x1d8] sm:$0xff] }
 0x208   : > { %v934_v6 = vadd.f32 1.0, %v1915_v4 }
 0x209   : > { %1676 = vmatpush1.bf16.xpose.msra.mxu1 %v1675_v1  ;;  %1920 = vrcp.f32 %v933_v5  ;;  %v1019_v1 = vld [vmem:[%s2423_s8 + $0x1b0] sm:$0xff] }
 0x20a   : > { %1678 = vmatprep.subr.bf16.mxu1 %v1677_v3  ;;  %1922 = vrcp.f32 %v934_v6  ;;  %v1028_v3 = vld [vmem:[%s2423_s8 + $0x1f8] sm:$0xff]  ;;  %v1775_v4 = vpack.c.bf16 %v1019_v1, %v1015_v0  ;;  %v1023_v6 = vld [vmem:[%s2423_s8 + $0x1d0] sm:$0xff] }
 0x20b   : > { %v1777_v5 = vpack.c.bf16 %v1028_v3, %v1024_v2  ;;  %v1779_v11 = vpack.c.bf16 %v1027_v8, %v1023_v6 }
 0x20f   : > { %v1917_v15 = vpop.eup %1916 }
 0x210   : > { %v1919_v16 = vpop.eup %1918  ;;  %v945_v18 = vmul.f32 %v1917_v15, %v2755_v29  ;;  %v1035_v15 = vld [vmem:[%s2423_s8 + $0x230] sm:$0xff] }
 0x211   : > { %v946_v21 = vmul.f32 %v1919_v16, %v2760_v33  ;;  %1680 = vmatpush1.bf16.xpose.msra.mxu1 %v1679_v12  ;;  %v1683_v33 = vpack.c.bf16 %v749_v27, %v747_v26  ;;  %v1781_v12 = vpack.c.bf16 %v1036_v10, %v1032_v9  ;;  %v1040_v16 = vld [vmem:[%s2423_s8 + $0x258] sm:$0xff] }
 0x212   : > { %v953_v25 = vmul.f32 %v945_v18, %v817_v42  ;;  %1682 = vmatprep.subr.bf16.mxu1 %v1681_v13  ;;  %v1757_v42 = vpack.c.bf16 %v988_v41, %v984_v40  ;;  %v1031_v13 = vld [vmem:[%s2423_s8 + $0x210] sm:$0xff]  ;;  %v1044_v18 = vld [vmem:[%s2423_s8 + $0x278] sm:$0xff] }
 0x213   : > { %v1921_v28 = vpop.eup %1920  ;;  %v954_v30 = vmul.f32 %v946_v21, %v819_v45  ;;  %v992_v45 = vld [vmem:[%s2423_s8 + $0xd8] sm:$0xff]  ;;  %v1783_v19 = vpack.c.bf16 %v1035_v15, %v1031_v13  ;;  %v1785_v20 = vpack.c.bf16 %v1044_v18, %v1040_v16  ;;  %v1039_v21 = vld [vmem:[%s2423_s8 + $0x250] sm:$0xff] }
 0x214   : > { %v1923_v32 = vpop.eup %1922  ;;  %v949_v29 = vmul.f32 %v1921_v28, %v2765_v7  ;;  %v1755_v7 = vpack.c.bf16 %v979_v39, %v975_v38  ;;  %v1761_v48 = vpack.c.bf16 %v996_v46, %v992_v45  ;;  %v1787_v26 = vpack.c.bf16 %v1043_v23, %v1039_v21  ;;  %v1047_v28 = vld [vmem:[%s2423_s8 + $0x290] sm:$0xff] }
 0x215   : > { %1157 = vmatprep.mubr.f32.mxu0 %v954_v30  ;;  %v950_v35 = vmul.f32 %v1923_v32, %v2768_v44  ;;  %v987_v44 = vld [vmem:[%s2423_s8 + $0xb0] sm:$0xff]  ;;  %v1060_v32 = vld [vmem:[%s2423_s8 + $0x2f8] sm:$0xff] }
 0x216   : > { %1158 = vmatmul.mubr.f32.vlgmr.msra.gmra.mrb[4].mxu0 %v953_v25  ;;  %v957_v36 = vmul.f32 %v949_v29, %v823_v53  ;;  %v1759_v47 = vpack.c.bf16 %v987_v44, %v983_v43  ;;  %v999_v53 = vld [vmem:[%s2423_s8 + $0x110] sm:$0xff]  ;;  %v1052_v25 = vld [vmem:[%s2423_s8 + $0x2b8] sm:$0xff] }
 0x217   : > { %v958_v37 = vmul.f32 %v950_v35, %v825_v55  ;;  %1752 = vmatpush1.bf16.xpose.msra.mxu0 %v1751_v31  ;;  %v1012_v55 = vld [vmem:[%s2423_s8 + $0x178] sm:$0xff]  ;;  %v1767_v56 = vpack.c.bf16 %v1003_v54, %v999_v53  ;;  %v1789_v27 = vpack.c.bf16 %v1052_v25, %v1048_v24  ;;  %v1051_v30 = vld [vmem:[%s2423_s8 + $0x2b0] sm:$0xff] }
 0x218   : > { %1754 = vmatprep.subr.bf16.mxu0 %v1753_v34  ;;  %v1056_v31 = vld [vmem:[%s2423_s8 + $0x2d8] sm:$0xff]  ;;  %v1791_v29 = vpack.c.bf16 %v1051_v30, %v1047_v28  ;;  %v1059_v35 = vld [vmem:[%s2423_s8 + $0x2f0] sm:$0xff] }
 0x219   : > { %1684 = vmatpush1.bf16.xpose.msra.mxu1 %v1683_v33  ;;  %1163 = vmatprep.mubr.f32.mxu0 %v958_v37  ;;  %v1793_v34 = vpack.c.bf16 %v1060_v32, %v1056_v31  ;;  %v1055_v33 = vld [vmem:[%s2423_s8 + $0x2d0] sm:$0xff]  ;;  %v1068_v37 = vld [vmem:[%s2423_s8 + $0x338] sm:$0xff] }
 0x21a   : > { %1164 = vmatmul.mubr.f32.gmra.mrb[6].mxu0 %v957_v36  ;;  %v1064_v36 = vld [vmem:[%s2423_s8 + $0x318] sm:$0xff]  ;;  %v1795_v38 = vpack.c.bf16 %v1059_v35, %v1055_v33  ;;  %v1063_v40 = vld [vmem:[%s2423_s8 + $0x310] sm:$0xff]  ;;  %v962_v33 = vld [vmem:[#allocation2 + $0x8] sm:$0xff] }
 0x21b   : > { %v1797_v39 = vpack.c.bf16 %v1068_v37, %v1064_v36  ;;  %v1067_v41 = vld [vmem:[%s2423_s8 + $0x330] sm:$0xff] }
 0x21c   : > { %v1799_v44 = vpack.c.bf16 %v1067_v41, %v1063_v40  ;;  %v1079_v53 = vld [vmem:[%s2423_s8 + $0x390] sm:$0xff]  ;;  %v964_v40 = vld [vmem:[#allocation2 + $0x18] sm:$0xff] }
 0x21d   : > { %v1083_v54 = vld [vmem:[%s2423_s8 + $0x3b0] sm:$0xff] }
 0x21f   : > { %1756 = vmatpush1.bf16.xpose.msra.mxu0 %v1755_v7  ;;  %v1072_v7 = vld [vmem:[%s2423_s8 + $0x358] sm:$0xff] }
 0x220   : > { %893 = vmatmul.mubr.f32.vlgmr.msra.gmra.mrb[8].mxu1 %v2570_v14  ;;  %1758 = vmatprep.subr.bf16.mxu0 %v1757_v42  ;;  %v995_v14 = vld [vmem:[%s2423_s8 + $0xf0] sm:$0xff]  ;;  %v1076_v42 = vld [vmem:[%s2423_s8 + $0x378] sm:$0xff] }
 0x221   : > { %898 = vmatprep.mubr.f32.mxu1 %v2572_v17  ;;  %v1763_v17 = vpack.c.bf16 %v995_v14, %v991_v49  ;;  %v1801_v46 = vpack.c.bf16 %v1076_v42, %v1072_v7  ;;  %v1071_v49 = vld [vmem:[%s2423_s8 + $0x350] sm:$0xff] }
 0x222   : > { %v1075_v14 = vld [vmem:[%s2423_s8 + $0x370] sm:$0xff] }
 0x224   : > { %899 = vmatmul.mubr.f32.gmra.mrb[10].mxu1 %v2580_v22  ;;  %v1008_v22 = vld [vmem:[%s2423_s8 + $0x158] sm:$0xff] }
 0x225   : > { %v1769_v57 = vpack.c.bf16 %v1012_v55, %v1008_v22  ;;  %v1088_v22 = vld [vmem:[%s2423_s8 + $0x3d8] sm:$0xff] }
 0x226   : > { %v1092_v55 = vld [vmem:[%s2423_s8 + $0x3f8] sm:$0xff] }
 0x227   : > { %1760 = vmatpush1.bf16.xpose.msra.mxu0 %v1759_v47 }
 0x228   : > { %1762 = vmatprep.subr.bf16.mxu0 %v1761_v48 }
 0x22f   : > { %1764 = vmatpush1.bf16.xpose.msra.mxu0 %v1763_v17  ;;  %v1803_v17 = vpack.c.bf16 %v1075_v14, %v1071_v49 }
 0x230   : > { %1766 = vmatprep.subr.bf16.mxu0 %v1765_v52  ;;  %v1805_v52 = vpack.c.bf16 %v1084_v51, %v1080_v50 }
 0x237   : > { %1768 = vmatpush1.bf16.xpose.msra.mxu0 %v1767_v56  ;;  %v1807_v56 = vpack.c.bf16 %v1083_v54, %v1079_v53 }
 0x238   : > { %1770 = vmatprep.subr.bf16.mxu0 %v1769_v57  ;;  %v1809_v57 = vpack.c.bf16 %v1092_v55, %v1088_v22 }
 0x23f   : > { %1772 = vmatpush1.bf16.xpose.msra.mxu0 %v1771_v62 }
 0x240   : > { %1774 = vmatprep.subr.bf16.mxu0 %v1773_v63 }
 0x247   : > { %1776 = vmatpush1.bf16.xpose.msra.mxu0 %v1775_v4 }
 0x248   : > { %1778 = vmatprep.subr.bf16.mxu0 %v1777_v5 }
 0x24f   : > { %1780 = vmatpush1.bf16.xpose.msra.mxu0 %v1779_v11 }
 0x250   : > { %1782 = vmatprep.subr.bf16.mxu0 %v1781_v12 }
 0x257   : > { %1784 = vmatpush1.bf16.xpose.msra.mxu0 %v1783_v19 }
 0x258   : > { %1786 = vmatprep.subr.bf16.mxu0 %v1785_v20 }
 0x25f   : > { %1788 = vmatpush1.bf16.xpose.msra.mxu0 %v1787_v26 }
 0x260   : > { %1790 = vmatprep.subr.bf16.mxu0 %v1789_v27 }
 0x267   : > { %1792 = vmatpush1.bf16.xpose.msra.mxu0 %v1791_v29 }
 0x268   : > { %1794 = vmatprep.subr.bf16.mxu0 %v1793_v34  ;;  %v961_v34 = vld [vmem:[#allocation2] sm:$0xff] }
 0x26f   : > { %1796 = vmatpush1.bf16.xpose.msra.mxu0 %v1795_v38 }
 0x270   : > { %1798 = vmatprep.subr.bf16.mxu0 %v1797_v39  ;;  %v963_v39 = vld [vmem:[#allocation2 + $0x10] sm:$0xff] }
 0x273   : > { %v612_v43 = vpop.f32.mrb[4].mxu1 }
 0x274   : > { %v614_v45 = vpop.f32.mrb[5].mxu1  ;;  %v907_v61 = vsub.f32 0.0, %v612_v43 }
 0x275   : > { %v908_v62 = vsub.f32 0.0, %v614_v45 }
 0x276   : > { %v917_v63 = vmul.f32 1.442695, %v907_v61 }
 0x277   : > { %v618_v47 = vpop.f32.mrb[6].mxu1  ;;  %1800 = vmatpush1.bf16.xpose.msra.mxu0 %v1799_v44  ;;  %v919_v1 = vmul.f32 1.442695, %v908_v62 }
 0x278   : > { %v620_v48 = vpop.f32.mrb[7].mxu1  ;;  %1802 = vmatprep.subr.bf16.mxu0 %v1801_v46  ;;  %v911_v0 = vsub.f32 0.0, %v618_v47  ;;  %1924 = vpow2.f32 %v917_v63 }
 0x279   : > { %v912_v2 = vsub.f32 0.0, %v620_v48  ;;  %1926 = vpow2.f32 %v919_v1 }
 0x27a   : > { %v925_v3 = vmul.f32 1.442695, %v911_v0 }
 0x27b   : > { %v927_v4 = vmul.f32 1.442695, %v912_v2 }
 0x27c   : > { %1928 = vpow2.f32 %v925_v3 }
 0x27d   : > { %1930 = vpow2.f32 %v927_v4 }
 0x27f   : > { %1804 = vmatpush1.bf16.xpose.msra.mxu0 %v1803_v17 }
 0x280   : > { %1806 = vmatprep.subr.bf16.mxu0 %v1805_v52 }
 0x282   : > { %v1925_v5 = vpop.eup %1924 }
 0x283   : > { %v1927_v6 = vpop.eup %1926  ;;  %v931_v8 = vadd.f32 1.0, %v1925_v5 }
 0x284   : > { %v932_v10 = vadd.f32 1.0, %v1927_v6 }
 0x285   : > { %1932 = vrcp.f32 %v931_v8 }
 0x286   : > { %v1929_v9 = vpop.eup %1928  ;;  %1934 = vrcp.f32 %v932_v10 }
 0x287   : > { %1808 = vmatpush1.bf16.xpose.msra.mxu0 %v1807_v56  ;;  %v1931_v11 = vpop.eup %1930  ;;  %v935_v12 = vadd.f32 1.0, %v1929_v9 }
 0x288   : > { %1810 = vmatprep.subr.bf16.mxu0 %v1809_v57  ;;  %v936_v13 = vadd.f32 1.0, %v1931_v11 }
 0x289   : > { %1936 = vrcp.f32 %v935_v12 }
 0x28a   : > { %1938 = vrcp.f32 %v936_v13 }
 0x28f   : > { %1812 = vmatpush1.bf16.xpose.msra.mxu0 %v1811_v60  ;;  %v1933_v15 = vpop.eup %1932 }
 0x290   : > { %v1935_v16 = vpop.eup %1934  ;;  %v947_v18 = vmul.f32 %v1933_v15, %v612_v43 }
 0x291   : > { %v948_v20 = vmul.f32 %v1935_v16, %v614_v45 }
 0x293   : > { %v1937_v19 = vpop.eup %1936 }
 0x294   : > { %v1939_v23 = vpop.eup %1938  ;;  %v951_v27 = vmul.f32 %v1937_v19, %v618_v47 }
 0x295   : > { %v952_v28 = vmul.f32 %v1939_v23, %v620_v48 }
 0x2f3   : > { %v894_v21 = vpop.f32.mrb[8].mxu1 }
 0x2f4   : > { %v955_v24 = vmul.f32 %v947_v18, %v894_v21  ;;  %v896_v25 = vpop.f32.mrb[9].mxu1 }
 0x2f5   : > { %v956_v26 = vmul.f32 %v948_v20, %v896_v25 }
 0x2f7   : > { %v900_v30 = vpop.f32.mrb[10].mxu1  ;;  %1234 = vmatprep.mubr.f32.mxu0 %v956_v26 }
 0x2f8   : > { %v959_v31 = vmul.f32 %v951_v27, %v900_v30  ;;  %v902_v32 = vpop.f32.mrb[11].mxu1  ;;  %1235 = vmatmul.mubr.f32.vlgmr.msra.gmra.mrb[4].mxu0 %v955_v24 }
 0x2f9   : > { %v960_v29 = vmul.f32 %v952_v28, %v902_v32 }
 0x2fb   : > { %1240 = vmatprep.mubr.f32.mxu0 %v960_v29 }
 0x2fc   : > { %1241 = vmatmul.mubr.f32.gmra.mrb[6].mxu0 %v959_v31 }
 0x3cb   : > { %v1236_v35 = vpop.f32.mrb[4].mxu0 }
 0x3cc   : > { %v1247_v36 = vadd.f32 %v1236_v35, %v961_v34  ;;  %v1238_v37 = vpop.f32.mrb[5].mxu0 }
 0x3cd   : > { %v1248_v38 = vadd.f32 %v1238_v37, %v962_v33  ;;  %1258 = sbr.rel (%p1419_p4) target bundleno = 988 (0x3dc), region = 60 }
 0x3ce   : > { %1251 = vst [vmem:[#allocation2] sm:$0xff] %v1247_v36 }
 0x3cf   : > { %1252 = vst [vmem:[#allocation2 + $0x8] sm:$0xff] %v1248_v38  ;;  %v1242_v41 = vpop.f32.mrb[6].mxu0 }
 0x3d0   : > { %v1249_v7 = vadd.f32 %v1242_v41, %v963_v39  ;;  %v1244_v42 = vpop.f32.mrb[7].mxu0 }
 0x3d1   : > { %v1250_v43 = vadd.f32 %v1244_v42, %v964_v40 }
 0x3d2   : > { %1253 = vst [vmem:[#allocation2 + $0x10] sm:$0xff] %v1249_v7 }
 0x3d3   : > { %1254 = vst [vmem:[#allocation2 + $0x18] sm:$0xff] %v1250_v43 }
 0x3d5   : > { %v1259_v44 = vld [vmem:[#allocation2] sm:$0xff] }
 0x3d6   : > { %v1260_v45 = vld [vmem:[#allocation2 + $0x8] sm:$0xff]  ;;  %1263 = vst [vmem:[#allocation11] sm:$0xff] %v1259_v44 }
 0x3d7   : > { %1264 = vst [vmem:[#allocation11 + $0x8] sm:$0xff] %v1260_v45 }
 0x3d9   : > { %v1261_v46 = vld [vmem:[#allocation2 + $0x10] sm:$0xff] }
 0x3da   : > { %1265 = vst [vmem:[#allocation11 + $0x10] sm:$0xff] %v1261_v46  ;;  %v1262_v47 = vld [vmem:[#allocation2 + $0x18] sm:$0xff] }
 0x3db   : > { %1266 = vst [vmem:[#allocation11 + $0x18] sm:$0xff] %v1262_v47 }
 0x3dc PF: > { %p1848_p7 = scmp.eq.s32.totalorder %s2293_s24, 1  ;;  %s2158_s30 = smov [#allocation11]  }
 0x3dd   : > { %s1277_s10 = sshll.u32 %s2158_s30, 4  ;;  %s1278_s10 = int_to_ptr.vmem [resolvable:$true] %s1277_s10 }
 0x3de   : > { %s2058_s15 = scalar_lea.vmem %s1278_s10, 512  ;;  %p2065_p6 = scmp.lt.s32.totalorder %s1278_s10, %s1278_s10 }
 0x3df   : > { %p2059_p9 = scmp.ne.s32.totalorder %s1278_s10, %s2058_s15  ;;  %p2066_p13 = scmp.lt.s32.totalorder %s2058_s15, %s2058_s15 }
 0x3e1   : > { %p2060_p12 = pnand %p2059_p9, %p1848_p7  ;;  %p2067_p3 = por %p2066_p13, %p2065_p6 }
 0x3e3   : > { %p2061_p10 = pneg %p2060_p12 }
 0x3e5   : > { %p2068_p2 = pnand %p2067_p3, %p2061_p10 }
 0x3e7   : > { %2071 = shalt.err (!%p2068_p2)
}
 0x3e8   : > { %s2072_s12 = scalar_lea.hbm %s2900_s4, 512 }
 0x3e9   : > { %p2073_p8 = scmp.ne.s32.totalorder %s2900_s4, %s2072_s12  ;;  %p2078_p0 = scmp.lt.u32.totalorder %s2072_s12, %s2900_s4 }
 0x3eb   : > { %p2074_p5 = pnand %p2073_p8, %p1848_p7 }
 0x3ed   : > { %p2075_p11 = pneg %p2074_p5 }
 0x3ef   : > { %p2080_p1 = pnand %p2078_p0, %p2075_p11 }
 0x3f1   : > { %2083 = shalt.err (!%p2080_p1)
}
 0x3f2   : > { %s2159_s29 = smov 256   ;;  %s2160_s25 = smov 16  }
 0x3f3   : > { %1828 = dma.vmem_to_hbm [thread:$0]  (%p1848_p7), %s1278_s10, 512, %s2900_s4, [#allocation5], %s2159_s29, %s2159_s29, %s2160_s25  }
 0x3f4   : > { %2121 = dma.done.wait (%p1848_p7), [#allocation5], 512  }
 0x3f5   : > { %2123 = vsyncadd (%p1848_p7), [#allocation5], 4294966784 }
 0x3f6 PF: > { %s22_s20 = sadd.s32 1, %s2146_s20   ;;  %s2930_s15 = smov %s2130_s16 }
 0x3f7   : > { %p19_p4 = scmp.ge.s32.totalorder %s22_s20, 4   ;;  %s2931_s16 = smov %s2134_s17 }
 0x3f8   : > { %s2932_s17 = smov %s2233_s27  ;;  %s2933_s18 = smov %s2142_s19 }
 0x3f9   : > { %s2934_s19 = smov %s2936_s21  ;;  %21 = sbr.rel (!%p19_p4) target bundleno = 11 (0xb), region = 112 }
 0x400   :  { %1293 = vsyncpa [#allocation4], 1 }
 0x401   :  { %1295 = vsyncpa [#allocation4 + $0x1], 1 }
 0x402   :  { %1296 = vsyncpa [#allocation7], 1 }
 0x403   :  { %1298 = vsyncpa [#allocation7 + $0x1], 1 }
 0x404   :  { %1299 = vsyncpa [#allocation10], 1 }
 0x405   :  { %1301 = vsyncpa [#allocation10 + $0x1], 1 }
 0x406   :  { %1302 = vsyncpa [#allocation5], 1 }
 0x407   :  { %1304 = vsyncpa [#allocation5 + $0x1], 1 }

</bundles_post_ra>
